<compile_context>
chip_gen: v6e
topology: v6e:2x2x1
jax: 0.10.0
libtpu: 0.0.40
codegen_flags: <defaults>
</compile_context>

<pallas_src>
from functools import partial

import jax
import jax.numpy as jnp
from jax.experimental import pallas as pl
from jax.experimental.pallas import tpu as pltpu


def _bilstm_kernel(xp_ref, wx_ref, b_ref, whh_ref, wc_ref, bc_ref, out_ref,
                   *, seq_len, bp, hidden):
    """Fused BiLSTM + Linear(2H -> 1) + sigmoid.

    xp_ref  : (T*Bp, 2E)  row block s = [x(time s) | x(time T-1-s)], batch-padded
    wx_ref  : (2E, 8H)    gate-interleaved input projection (fwd rows | bwd rows)
    b_ref   : (1, 8H)     gate-interleaved bias (b_ih + b_hh, both directions)
    whh_ref : (2H, 8H)    block-diagonal recurrent weight over [h_f | h_b]
    wc_ref  : (1, 2H)     classifier weight  [w_c_fwd | w_c_bwd]
    bc_ref  : (1, 1)      classifier bias
    out_ref : (2, Bp, T)  [0] = scores, [1] = sigmoid(scores), batch-major
    """
    H = hidden
    H2 = 2 * H

    # Hoisted input projection for both directions / both time orders:
    # one well-shaped MXU matmul.  Kept in vregs (no VMEM scratch round trip).
    gx = jnp.dot(xp_ref[...], wx_ref[...],
                 preferred_element_type=jnp.float32) + b_ref[...]

    w_bd = whh_ref[...]          # (2H, 8H) block-diagonal recurrent weight
    wc = wc_ref[...]             # (1, 2H)
    bc = bc_ref[...]             # (1, 1)

    h_cat = jnp.zeros((bp, H2), jnp.float32)   # [h_fwd | h_bwd]
    c_cat = jnp.zeros((bp, H2), jnp.float32)   # [c_fwd | c_bwd]

    sf = [None] * seq_len   # classifier fwd partials, indexed by timestep
    sb = [None] * seq_len   # classifier bwd partials, indexed by timestep

    # TODO(synk): for large seq_len switch to lax.fori_loop(..., unroll=2..4)
    # with VMEM scratch for gx / h; a full Python unroll is right at T=8.
    for s in range(seq_len):
        r0 = s * bp
        # ONE recurrent matmul per step for BOTH directions (block-diag W).
        g = gx[r0:r0 + bp, :] + jnp.dot(h_cat, w_bd,
                                        preferred_element_type=jnp.float32)
        # Full-width activations (whole-vreg EUP passes), slice afterwards.
        sg = jax.nn.sigmoid(g)
        tg = jnp.tanh(g)
        i_cat = sg[:, 0 * H2:1 * H2]     # [i_f | i_b]
        f_cat = sg[:, 1 * H2:2 * H2]     # [f_f | f_b]
        g_cat = tg[:, 2 * H2:3 * H2]     # [g_f | g_b]
        o_cat = sg[:, 3 * H2:4 * H2]     # [o_f | o_b]
        c_cat = f_cat * c_cat + i_cat * g_cat
        h_cat = o_cat * jnp.tanh(c_cat)
        # Classifier Linear(2H -> 1) split per direction; lane reductions off
        # the recurrence's serial dependency chain.  fwd half is timestep s,
        # bwd half is timestep T-1-s.
        sf[s] = jnp.sum(h_cat[:, 0:H] * wc[:, 0:H], axis=-1, keepdims=True)
        sb[seq_len - 1 - s] = jnp.sum(h_cat[:, H:H2] * wc[:, H:H2],
                                      axis=-1, keepdims=True)

    # Assemble outputs directly in the final batch-major layout: ONE packed
    # output buffer, no wrapper-side transpose/reshape round trips.
    scores_bt = jnp.concatenate(
        [sf[t] + sb[t] + bc for t in range(seq_len)], axis=1)   # (Bp, T)
    out_ref[0, :, :] = scores_bt
    out_ref[1, :, :] = jax.nn.sigmoid(scores_bt)


def _full_spec(shape):
    n = len(shape)
    return pl.BlockSpec(shape, lambda *_: (0,) * n)


@jax.jit
def simple_bilstm_scores(packed, x):
    """Returns scores (B, T, 1) and prob = sigmoid(scores)[:, :, 0] (B, T)."""
    B, T, E = x.shape
    H = packed["w_hh"].shape[0] // 2
    Bp = max(8, ((B + 7) // 8) * 8)       # pad batch to the sublane width

    # Batch-pad + time-major + fwd/bwd time pairing: row block s of x_pair is
    # [x(s) | x(T-1-s)], so every per-step kernel slice is an aligned block
    # and both directions share a single input-projection matmul.
    x_pad = jnp.zeros((Bp, T, E), jnp.float32).at[:B].set(x.astype(jnp.float32))
    x_tm = jnp.transpose(x_pad, (1, 0, 2))                  # (T, Bp, E)
    x_pair = jnp.concatenate([x_tm, x_tm[::-1]], axis=-1)   # (T, Bp, 2E)
    x_flat = jnp.reshape(x_pair, (T * Bp, 2 * E))

    in_specs = [
        _full_spec((T * Bp, 2 * E)),
        _full_spec((2 * E, 8 * H)),
        _full_spec((1, 8 * H)),
        _full_spec((2 * H, 8 * H)),
        _full_spec((1, 2 * H)),
        _full_spec((1, 1)),
    ]
    out = pl.pallas_call(
        partial(_bilstm_kernel, seq_len=T, bp=Bp, hidden=H),
        in_specs=in_specs,
        out_specs=_full_spec((2, Bp, T)),
        out_shape=jax.ShapeDtypeStruct((2, Bp, T), jnp.float32),
        # Everything is a few hundred KB; explicit limit leaves the scoped
        # VMEM default untouched and is safe on v5e/v6e/v7x.
        compiler_params=pltpu.CompilerParams(vmem_limit_bytes=8 * 1024 * 1024),
    )(x_flat, packed["w_x"], packed["b"], packed["w_hh"],
      packed["w_c"], packed["b_c"])

    scores = out[0, :B, :, None]       # (B, T, 1)
    prob = out[1, :B, :]               # (B, T)
    return scores, prob


def simple_bilstm_forward(packed, x, lengths=None, threshold=0.4):
    # `lengths` accepted for API parity but unused (the PyTorch forward never
    # packs); `self.th` is never initialized in the module, so `threshold` is
    # used directly.
    del lengths
    scores, prob = simple_bilstm_scores(packed, x)
    # Note: host transfer + Python list build dominates end-to-end latency;
    # kept only to mirror the PyTorch return signature.
    tag_seq = jax.device_get(prob > threshold)                  # (B, T) bool
    tag_list = [tag_seq[i].tolist() for i in range(tag_seq.shape[0])]
    return scores, tag_list


# ---------------------------------------------------------------------------
# Parameter construction / packing
# ---------------------------------------------------------------------------

def make_params(key, E, H):
    """Keras-like init (xavier W_ih / classifier, forget-gate bias = 1).

    Weights stored pre-transposed as (in_features, out_features); LSTM gate
    order is PyTorch's (i, f, g, o); b = b_ih + b_hh.
    """
    ks = jax.random.split(key, 5)

    def xavier(k, shape):
        s = float(jnp.sqrt(6.0 / (shape[0] + shape[1])))
        return jax.random.uniform(k, shape, jnp.float32, -s, s)

    def lstm_bias():
        b = jnp.zeros((4 * H,), jnp.float32)
        return b.at[H:2 * H].set(1.0)          # forget-gate bias = 1

    return dict(
        w_ih_f=xavier(ks[0], (E, 4 * H)),      # W_ih_fwd^T
        w_hh_f=xavier(ks[1], (H, 4 * H)),      # W_hh_fwd^T (orthogonal in torch)
        b_f=lstm_bias(),
        w_ih_b=xavier(ks[2], (E, 4 * H)),      # W_ih_bwd^T
        w_hh_b=xavier(ks[3], (H, 4 * H)),      # W_hh_bwd^T
        b_b=lstm_bias(),
        w_c=xavier(ks[4], (1, 2 * H)),         # classifier weight
        b_c=jnp.zeros((1, 1), jnp.float32),    # classifier bias
    )


def _interleave_gate_cols(w_f, w_b):
    """(in,4H),(in,4H) gate order (i,f,g,o) -> (in,8H) cols [i_f|i_b|f_f|f_b|...]."""
    n, four_h = w_f.shape
    h = four_h // 4
    a = w_f.reshape(n, 4, 1, h)
    b = w_b.reshape(n, 4, 1, h)
    return jnp.concatenate([a, b], axis=2).reshape(n, 8 * h)


def pack_params(params):
    """Pack per-direction weights into the fused kernel layout (done once)."""
    E = params["w_ih_f"].shape[0]
    H = params["w_hh_f"].shape[0]
    zE = jnp.zeros((E, 4 * H), jnp.float32)
    zH = jnp.zeros((H, 4 * H), jnp.float32)
    # Input projection: rows 0:E act on x(t)     -> forward-gate columns,
    #                   rows E:2E act on x(T-1-t) -> backward-gate columns.
    w_x = jnp.concatenate([_interleave_gate_cols(params["w_ih_f"], zE),
                           _interleave_gate_cols(zE, params["w_ih_b"])], axis=0)
    # Recurrent weight: block-diagonal over [h_f | h_b].
    w_hh = jnp.concatenate([_interleave_gate_cols(params["w_hh_f"], zH),
                            _interleave_gate_cols(zH, params["w_hh_b"])], axis=0)
    b = _interleave_gate_cols(params["b_f"][None, :], params["b_b"][None, :])
    return dict(w_x=w_x, b=b, w_hh=w_hh, w_c=params["w_c"], b_c=params["b_c"])


# ---------------------------------------------------------------------------
# Pure-JAX reference (same math, no Pallas) for validation
# ---------------------------------------------------------------------------

def _ref_forward(params, x):
    B, T, E = x.shape
    H = params["w_hh_f"].shape[0]

    def cell(x_t, h, c, w_ih, w_hh, b):
        g = x_t @ w_ih + h @ w_hh + b
        i = jax.nn.sigmoid(g[:, 0:H])
        f = jax.nn.sigmoid(g[:, H:2 * H])
        gg = jnp.tanh(g[:, 2 * H:3 * H])
        o = jax.nn.sigmoid(g[:, 3 * H:4 * H])
        c2 = f * c + i * gg
        return o * jnp.tanh(c2), c2

    hf = jnp.zeros((B, H)); cf = jnp.zeros((B, H)); fwd = []
    for t in range(T):
        hf, cf = cell(x[:, t], hf, cf,
                      params["w_ih_f"], params["w_hh_f"], params["b_f"])
        fwd.append(hf)
    hb = jnp.zeros((B, H)); cb = jnp.zeros((B, H)); bwd = [None] * T
    for t in range(T - 1, -1, -1):
        hb, cb = cell(x[:, t], hb, cb,
                      params["w_ih_b"], params["w_hh_b"], params["b_b"])
        bwd[t] = hb
    hcat = jnp.concatenate([jnp.stack(fwd, 1), jnp.stack(bwd, 1)], axis=-1)
    scores = (jnp.einsum("btd,d->bt", hcat, params["w_c"][0])
              + params["b_c"][0, 0])[..., None]                  # (B, T, 1)
    prob = jax.nn.sigmoid(scores[:, :, 0])
    return scores, prob


if __name__ == "__main__":
    # input_size=32, hidden_units=32, batch=2, seq=8
    B, T, E, H = 2, 8, 32, 32
    key = jax.random.PRNGKey(0)
    kx, kp = jax.random.split(key)

    x = jax.random.normal(kx, (B, T, E), jnp.float32)
    params = make_params(kp, E, H)
    packed = pack_params(params)

    scores, tag_list = simple_bilstm_forward(packed, x, lengths=None,
                                             threshold=0.4)
    scores = jax.block_until_ready(scores)
    _, prob = simple_bilstm_scores(packed, x)
    prob = jax.block_until_ready(prob)

    ref_scores, ref_prob = _ref_forward(params, x)
    assert scores.shape == (B, T, 1)
    assert prob.shape == (B, T)
    assert jnp.allclose(scores, ref_scores, atol=1e-3, rtol=1e-3), "scores mismatch"
    assert jnp.allclose(prob, ref_prob, atol=1e-3, rtol=1e-3), "prob mismatch"
    assert len(tag_list) == B and all(len(t) == T for t in tag_list)

    print("KERNEL_OK")
</pallas_src>

<mosaic_0001>
module attributes {stable_mosaic.version = 11 : i64} {
  func.func @_bilstm_kernel(%arg0: memref<64x64xf32, #tpu.memory_space<vmem>>, %arg1: memref<64x256xf32, #tpu.memory_space<vmem>>, %arg2: memref<1x256xf32, #tpu.memory_space<vmem>>, %arg3: memref<64x256xf32, #tpu.memory_space<vmem>>, %arg4: memref<1x64xf32, #tpu.memory_space<vmem>>, %arg5: memref<1x1xf32, #tpu.memory_space<vmem>>, %arg6: memref<2x8x8xf32, #tpu.memory_space<vmem>>) attributes {dimension_semantics = [], scalar_prefetch = 0 : i64, scratch_operands = 0 : i64, tpu.core_type = #tpu.core_type<tc>} {
    %c0 = arith.constant 0 : index
    %c0_0 = arith.constant 0 : index
    %0 = vector.load %arg0[%c0, %c0_0] : memref<64x64xf32, #tpu.memory_space<vmem>>, vector<64x64xf32>
    %c0_1 = arith.constant 0 : index
    %c0_2 = arith.constant 0 : index
    %1 = vector.load %arg1[%c0_1, %c0_2] : memref<64x256xf32, #tpu.memory_space<vmem>>, vector<64x256xf32>
    %cst = arith.constant dense<0.000000e+00> : vector<64x256xf32>
    %2 = tpu.matmul %0, %1, %cst {dimension_numbers = #tpu.dot_dimension_numbers<[1], [0], [0], [1], [0, 0, 1, 1], [], []>} : vector<64x64xf32>, vector<64x256xf32>, vector<64x256xf32> -> vector<64x256xf32>
    %c0_3 = arith.constant 0 : index
    %c0_4 = arith.constant 0 : index
    %3 = vector.load %arg2[%c0_3, %c0_4] : memref<1x256xf32, #tpu.memory_space<vmem>>, vector<1x256xf32>
    %4 = vector.broadcast %3 : vector<1x256xf32> to vector<64x256xf32>
    %5 = arith.addf %2, %4 : vector<64x256xf32>
    %c0_5 = arith.constant 0 : index
    %c0_6 = arith.constant 0 : index
    %6 = vector.load %arg3[%c0_5, %c0_6] : memref<64x256xf32, #tpu.memory_space<vmem>>, vector<64x256xf32>
    %c0_7 = arith.constant 0 : index
    %c0_8 = arith.constant 0 : index
    %7 = vector.load %arg4[%c0_7, %c0_8] : memref<1x64xf32, #tpu.memory_space<vmem>>, vector<1x64xf32>
    %c0_9 = arith.constant 0 : index
    %c0_10 = arith.constant 0 : index
    %8 = vector.load %arg5[%c0_9, %c0_10] : memref<1x1xf32, #tpu.memory_space<vmem>>, vector<1x1xf32>
    %cst_11 = arith.constant 0.000000e+00 : f32
    %9 = vector.broadcast %cst_11 : f32 to vector<8x64xf32>
    %cst_12 = arith.constant 0.000000e+00 : f32
    %10 = vector.broadcast %cst_12 : f32 to vector<8x64xf32>
    %11 = vector.extract_strided_slice %5 {offsets = [0, 0], sizes = [8, 256], strides = [1, 1]} : vector<64x256xf32> to vector<8x256xf32>
    %cst_13 = arith.constant dense<0.000000e+00> : vector<8x256xf32>
    %12 = tpu.matmul %9, %6, %cst_13 {dimension_numbers = #tpu.dot_dimension_numbers<[1], [0], [0], [1], [0, 0, 1, 1], [], []>} : vector<8x64xf32>, vector<64x256xf32>, vector<8x256xf32> -> vector<8x256xf32>
    %13 = arith.addf %11, %12 : vector<8x256xf32>
    %14 = arith.negf %13 : vector<8x256xf32>
    %15 = math.exp %14 : vector<8x256xf32>
    %cst_14 = arith.constant 1.000000e+00 : f32
    %16 = vector.broadcast %cst_14 : f32 to vector<8x256xf32>
    %17 = arith.addf %16, %15 : vector<8x256xf32>
    %18 = arith.divf %16, %17 : vector<8x256xf32>
    %19 = math.tanh %13 : vector<8x256xf32>
    %20 = vector.extract_strided_slice %18 {offsets = [0, 0], sizes = [8, 64], strides = [1, 1]} : vector<8x256xf32> to vector<8x64xf32>
    %21 = vector.extract_strided_slice %18 {offsets = [0, 64], sizes = [8, 64], strides = [1, 1]} : vector<8x256xf32> to vector<8x64xf32>
    %22 = vector.extract_strided_slice %19 {offsets = [0, 128], sizes = [8, 64], strides = [1, 1]} : vector<8x256xf32> to vector<8x64xf32>
    %23 = vector.extract_strided_slice %18 {offsets = [0, 192], sizes = [8, 64], strides = [1, 1]} : vector<8x256xf32> to vector<8x64xf32>
    %24 = arith.mulf %21, %10 : vector<8x64xf32>
    %25 = arith.mulf %20, %22 : vector<8x64xf32>
    %26 = arith.addf %24, %25 : vector<8x64xf32>
    %27 = math.tanh %26 : vector<8x64xf32>
    %28 = arith.mulf %23, %27 : vector<8x64xf32>
    %29 = vector.extract_strided_slice %28 {offsets = [0, 0], sizes = [8, 32], strides = [1, 1]} : vector<8x64xf32> to vector<8x32xf32>
    %30 = vector.extract_strided_slice %7 {offsets = [0, 0], sizes = [1, 32], strides = [1, 1]} : vector<1x64xf32> to vector<1x32xf32>
    %31 = vector.broadcast %30 : vector<1x32xf32> to vector<8x32xf32>
    %32 = arith.mulf %29, %31 : vector<8x32xf32>
    %cst_15 = arith.constant dense<0.000000e+00> : vector<8xf32>
    %33 = vector.multi_reduction <add>, %32, %cst_15 [1] : vector<8x32xf32> to vector<8xf32>
    %34 = vector.shape_cast %33 : vector<8xf32> to vector<8x1xf32>
    %35 = vector.extract_strided_slice %28 {offsets = [0, 32], sizes = [8, 32], strides = [1, 1]} : vector<8x64xf32> to vector<8x32xf32>
    %36 = vector.extract_strided_slice %7 {offsets = [0, 32], sizes = [1, 32], strides = [1, 1]} : vector<1x64xf32> to vector<1x32xf32>
    %37 = vector.broadcast %36 : vector<1x32xf32> to vector<8x32xf32>
    %38 = arith.mulf %35, %37 : vector<8x32xf32>
    %cst_16 = arith.constant dense<0.000000e+00> : vector<8xf32>
    %39 = vector.multi_reduction <add>, %38, %cst_16 [1] : vector<8x32xf32> to vector<8xf32>
    %40 = vector.shape_cast %39 : vector<8xf32> to vector<8x1xf32>
    %41 = vector.extract_strided_slice %5 {offsets = [8, 0], sizes = [8, 256], strides = [1, 1]} : vector<64x256xf32> to vector<8x256xf32>
    %cst_17 = arith.constant dense<0.000000e+00> : vector<8x256xf32>
    %42 = tpu.matmul %28, %6, %cst_17 {dimension_numbers = #tpu.dot_dimension_numbers<[1], [0], [0], [1], [0, 0, 1, 1], [], []>} : vector<8x64xf32>, vector<64x256xf32>, vector<8x256xf32> -> vector<8x256xf32>
    %43 = arith.addf %41, %42 : vector<8x256xf32>
    %44 = arith.negf %43 : vector<8x256xf32>
    %45 = math.exp %44 : vector<8x256xf32>
    %cst_18 = arith.constant 1.000000e+00 : f32
    %46 = vector.broadcast %cst_18 : f32 to vector<8x256xf32>
    %47 = arith.addf %46, %45 : vector<8x256xf32>
    %48 = arith.divf %46, %47 : vector<8x256xf32>
    %49 = math.tanh %43 : vector<8x256xf32>
    %50 = vector.extract_strided_slice %48 {offsets = [0, 0], sizes = [8, 64], strides = [1, 1]} : vector<8x256xf32> to vector<8x64xf32>
    %51 = vector.extract_strided_slice %48 {offsets = [0, 64], sizes = [8, 64], strides = [1, 1]} : vector<8x256xf32> to vector<8x64xf32>
    %52 = vector.extract_strided_slice %49 {offsets = [0, 128], sizes = [8, 64], strides = [1, 1]} : vector<8x256xf32> to vector<8x64xf32>
    %53 = vector.extract_strided_slice %48 {offsets = [0, 192], sizes = [8, 64], strides = [1, 1]} : vector<8x256xf32> to vector<8x64xf32>
    %54 = arith.mulf %51, %26 : vector<8x64xf32>
    %55 = arith.mulf %50, %52 : vector<8x64xf32>
    %56 = arith.addf %54, %55 : vector<8x64xf32>
    %57 = math.tanh %56 : vector<8x64xf32>
    %58 = arith.mulf %53, %57 : vector<8x64xf32>
    %59 = vector.extract_strided_slice %58 {offsets = [0, 0], sizes = [8, 32], strides = [1, 1]} : vector<8x64xf32> to vector<8x32xf32>
    %60 = vector.extract_strided_slice %7 {offsets = [0, 0], sizes = [1, 32], strides = [1, 1]} : vector<1x64xf32> to vector<1x32xf32>
    %61 = vector.broadcast %60 : vector<1x32xf32> to vector<8x32xf32>
    %62 = arith.mulf %59, %61 : vector<8x32xf32>
    %cst_19 = arith.constant dense<0.000000e+00> : vector<8xf32>
    %63 = vector.multi_reduction <add>, %62, %cst_19 [1] : vector<8x32xf32> to vector<8xf32>
    %64 = vector.shape_cast %63 : vector<8xf32> to vector<8x1xf32>
    %65 = vector.extract_strided_slice %58 {offsets = [0, 32], sizes = [8, 32], strides = [1, 1]} : vector<8x64xf32> to vector<8x32xf32>
    %66 = vector.extract_strided_slice %7 {offsets = [0, 32], sizes = [1, 32], strides = [1, 1]} : vector<1x64xf32> to vector<1x32xf32>
    %67 = vector.broadcast %66 : vector<1x32xf32> to vector<8x32xf32>
    %68 = arith.mulf %65, %67 : vector<8x32xf32>
    %cst_20 = arith.constant dense<0.000000e+00> : vector<8xf32>
    %69 = vector.multi_reduction <add>, %68, %cst_20 [1] : vector<8x32xf32> to vector<8xf32>
    %70 = vector.shape_cast %69 : vector<8xf32> to vector<8x1xf32>
    %71 = vector.extract_strided_slice %5 {offsets = [16, 0], sizes = [8, 256], strides = [1, 1]} : vector<64x256xf32> to vector<8x256xf32>
    %cst_21 = arith.constant dense<0.000000e+00> : vector<8x256xf32>
    %72 = tpu.matmul %58, %6, %cst_21 {dimension_numbers = #tpu.dot_dimension_numbers<[1], [0], [0], [1], [0, 0, 1, 1], [], []>} : vector<8x64xf32>, vector<64x256xf32>, vector<8x256xf32> -> vector<8x256xf32>
    %73 = arith.addf %71, %72 : vector<8x256xf32>
    %74 = arith.negf %73 : vector<8x256xf32>
    %75 = math.exp %74 : vector<8x256xf32>
    %cst_22 = arith.constant 1.000000e+00 : f32
    %76 = vector.broadcast %cst_22 : f32 to vector<8x256xf32>
    %77 = arith.addf %76, %75 : vector<8x256xf32>
    %78 = arith.divf %76, %77 : vector<8x256xf32>
    %79 = math.tanh %73 : vector<8x256xf32>
    %80 = vector.extract_strided_slice %78 {offsets = [0, 0], sizes = [8, 64], strides = [1, 1]} : vector<8x256xf32> to vector<8x64xf32>
    %81 = vector.extract_strided_slice %78 {offsets = [0, 64], sizes = [8, 64], strides = [1, 1]} : vector<8x256xf32> to vector<8x64xf32>
    %82 = vector.extract_strided_slice %79 {offsets = [0, 128], sizes = [8, 64], strides = [1, 1]} : vector<8x256xf32> to vector<8x64xf32>
    %83 = vector.extract_strided_slice %78 {offsets = [0, 192], sizes = [8, 64], strides = [1, 1]} : vector<8x256xf32> to vector<8x64xf32>
    %84 = arith.mulf %81, %56 : vector<8x64xf32>
    %85 = arith.mulf %80, %82 : vector<8x64xf32>
    %86 = arith.addf %84, %85 : vector<8x64xf32>
    %87 = math.tanh %86 : vector<8x64xf32>
    %88 = arith.mulf %83, %87 : vector<8x64xf32>
    %89 = vector.extract_strided_slice %88 {offsets = [0, 0], sizes = [8, 32], strides = [1, 1]} : vector<8x64xf32> to vector<8x32xf32>
    %90 = vector.extract_strided_slice %7 {offsets = [0, 0], sizes = [1, 32], strides = [1, 1]} : vector<1x64xf32> to vector<1x32xf32>
    %91 = vector.broadcast %90 : vector<1x32xf32> to vector<8x32xf32>
    %92 = arith.mulf %89, %91 : vector<8x32xf32>
    %cst_23 = arith.constant dense<0.000000e+00> : vector<8xf32>
    %93 = vector.multi_reduction <add>, %92, %cst_23 [1] : vector<8x32xf32> to vector<8xf32>
    %94 = vector.shape_cast %93 : vector<8xf32> to vector<8x1xf32>
    %95 = vector.extract_strided_slice %88 {offsets = [0, 32], sizes = [8, 32], strides = [1, 1]} : vector<8x64xf32> to vector<8x32xf32>
    %96 = vector.extract_strided_slice %7 {offsets = [0, 32], sizes = [1, 32], strides = [1, 1]} : vector<1x64xf32> to vector<1x32xf32>
    %97 = vector.broadcast %96 : vector<1x32xf32> to vector<8x32xf32>
    %98 = arith.mulf %95, %97 : vector<8x32xf32>
    %cst_24 = arith.constant dense<0.000000e+00> : vector<8xf32>
    %99 = vector.multi_reduction <add>, %98, %cst_24 [1] : vector<8x32xf32> to vector<8xf32>
    %100 = vector.shape_cast %99 : vector<8xf32> to vector<8x1xf32>
    %101 = vector.extract_strided_slice %5 {offsets = [24, 0], sizes = [8, 256], strides = [1, 1]} : vector<64x256xf32> to vector<8x256xf32>
    %cst_25 = arith.constant dense<0.000000e+00> : vector<8x256xf32>
    %102 = tpu.matmul %88, %6, %cst_25 {dimension_numbers = #tpu.dot_dimension_numbers<[1], [0], [0], [1], [0, 0, 1, 1], [], []>} : vector<8x64xf32>, vector<64x256xf32>, vector<8x256xf32> -> vector<8x256xf32>
    %103 = arith.addf %101, %102 : vector<8x256xf32>
    %104 = arith.negf %103 : vector<8x256xf32>
    %105 = math.exp %104 : vector<8x256xf32>
    %cst_26 = arith.constant 1.000000e+00 : f32
    %106 = vector.broadcast %cst_26 : f32 to vector<8x256xf32>
    %107 = arith.addf %106, %105 : vector<8x256xf32>
    %108 = arith.divf %106, %107 : vector<8x256xf32>
    %109 = math.tanh %103 : vector<8x256xf32>
    %110 = vector.extract_strided_slice %108 {offsets = [0, 0], sizes = [8, 64], strides = [1, 1]} : vector<8x256xf32> to vector<8x64xf32>
    %111 = vector.extract_strided_slice %108 {offsets = [0, 64], sizes = [8, 64], strides = [1, 1]} : vector<8x256xf32> to vector<8x64xf32>
    %112 = vector.extract_strided_slice %109 {offsets = [0, 128], sizes = [8, 64], strides = [1, 1]} : vector<8x256xf32> to vector<8x64xf32>
    %113 = vector.extract_strided_slice %108 {offsets = [0, 192], sizes = [8, 64], strides = [1, 1]} : vector<8x256xf32> to vector<8x64xf32>
    %114 = arith.mulf %111, %86 : vector<8x64xf32>
    %115 = arith.mulf %110, %112 : vector<8x64xf32>
    %116 = arith.addf %114, %115 : vector<8x64xf32>
    %117 = math.tanh %116 : vector<8x64xf32>
    %118 = arith.mulf %113, %117 : vector<8x64xf32>
    %119 = vector.extract_strided_slice %118 {offsets = [0, 0], sizes = [8, 32], strides = [1, 1]} : vector<8x64xf32> to vector<8x32xf32>
    %120 = vector.extract_strided_slice %7 {offsets = [0, 0], sizes = [1, 32], strides = [1, 1]} : vector<1x64xf32> to vector<1x32xf32>
    %121 = vector.broadcast %120 : vector<1x32xf32> to vector<8x32xf32>
    %122 = arith.mulf %119, %121 : vector<8x32xf32>
    %cst_27 = arith.constant dense<0.000000e+00> : vector<8xf32>
    %123 = vector.multi_reduction <add>, %122, %cst_27 [1] : vector<8x32xf32> to vector<8xf32>
    %124 = vector.shape_cast %123 : vector<8xf32> to vector<8x1xf32>
    %125 = vector.extract_strided_slice %118 {offsets = [0, 32], sizes = [8, 32], strides = [1, 1]} : vector<8x64xf32> to vector<8x32xf32>
    %126 = vector.extract_strided_slice %7 {offsets = [0, 32], sizes = [1, 32], strides = [1, 1]} : vector<1x64xf32> to vector<1x32xf32>
    %127 = vector.broadcast %126 : vector<1x32xf32> to vector<8x32xf32>
    %128 = arith.mulf %125, %127 : vector<8x32xf32>
    %cst_28 = arith.constant dense<0.000000e+00> : vector<8xf32>
    %129 = vector.multi_reduction <add>, %128, %cst_28 [1] : vector<8x32xf32> to vector<8xf32>
    %130 = vector.shape_cast %129 : vector<8xf32> to vector<8x1xf32>
    %131 = vector.extract_strided_slice %5 {offsets = [32, 0], sizes = [8, 256], strides = [1, 1]} : vector<64x256xf32> to vector<8x256xf32>
    %cst_29 = arith.constant dense<0.000000e+00> : vector<8x256xf32>
    %132 = tpu.matmul %118, %6, %cst_29 {dimension_numbers = #tpu.dot_dimension_numbers<[1], [0], [0], [1], [0, 0, 1, 1], [], []>} : vector<8x64xf32>, vector<64x256xf32>, vector<8x256xf32> -> vector<8x256xf32>
    %133 = arith.addf %131, %132 : vector<8x256xf32>
    %134 = arith.negf %133 : vector<8x256xf32>
    %135 = math.exp %134 : vector<8x256xf32>
    %cst_30 = arith.constant 1.000000e+00 : f32
    %136 = vector.broadcast %cst_30 : f32 to vector<8x256xf32>
    %137 = arith.addf %136, %135 : vector<8x256xf32>
    %138 = arith.divf %136, %137 : vector<8x256xf32>
    %139 = math.tanh %133 : vector<8x256xf32>
    %140 = vector.extract_strided_slice %138 {offsets = [0, 0], sizes = [8, 64], strides = [1, 1]} : vector<8x256xf32> to vector<8x64xf32>
    %141 = vector.extract_strided_slice %138 {offsets = [0, 64], sizes = [8, 64], strides = [1, 1]} : vector<8x256xf32> to vector<8x64xf32>
    %142 = vector.extract_strided_slice %139 {offsets = [0, 128], sizes = [8, 64], strides = [1, 1]} : vector<8x256xf32> to vector<8x64xf32>
    %143 = vector.extract_strided_slice %138 {offsets = [0, 192], sizes = [8, 64], strides = [1, 1]} : vector<8x256xf32> to vector<8x64xf32>
    %144 = arith.mulf %141, %116 : vector<8x64xf32>
    %145 = arith.mulf %140, %142 : vector<8x64xf32>
    %146 = arith.addf %144, %145 : vector<8x64xf32>
    %147 = math.tanh %146 : vector<8x64xf32>
    %148 = arith.mulf %143, %147 : vector<8x64xf32>
    %149 = vector.extract_strided_slice %148 {offsets = [0, 0], sizes = [8, 32], strides = [1, 1]} : vector<8x64xf32> to vector<8x32xf32>
    %150 = vector.extract_strided_slice %7 {offsets = [0, 0], sizes = [1, 32], strides = [1, 1]} : vector<1x64xf32> to vector<1x32xf32>
    %151 = vector.broadcast %150 : vector<1x32xf32> to vector<8x32xf32>
    %152 = arith.mulf %149, %151 : vector<8x32xf32>
    %cst_31 = arith.constant dense<0.000000e+00> : vector<8xf32>
    %153 = vector.multi_reduction <add>, %152, %cst_31 [1] : vector<8x32xf32> to vector<8xf32>
    %154 = vector.shape_cast %153 : vector<8xf32> to vector<8x1xf32>
    %155 = vector.extract_strided_slice %148 {offsets = [0, 32], sizes = [8, 32], strides = [1, 1]} : vector<8x64xf32> to vector<8x32xf32>
    %156 = vector.extract_strided_slice %7 {offsets = [0, 32], sizes = [1, 32], strides = [1, 1]} : vector<1x64xf32> to vector<1x32xf32>
    %157 = vector.broadcast %156 : vector<1x32xf32> to vector<8x32xf32>
    %158 = arith.mulf %155, %157 : vector<8x32xf32>
    %cst_32 = arith.constant dense<0.000000e+00> : vector<8xf32>
    %159 = vector.multi_reduction <add>, %158, %cst_32 [1] : vector<8x32xf32> to vector<8xf32>
    %160 = vector.shape_cast %159 : vector<8xf32> to vector<8x1xf32>
    %161 = vector.extract_strided_slice %5 {offsets = [40, 0], sizes = [8, 256], strides = [1, 1]} : vector<64x256xf32> to vector<8x256xf32>
    %cst_33 = arith.constant dense<0.000000e+00> : vector<8x256xf32>
    %162 = tpu.matmul %148, %6, %cst_33 {dimension_numbers = #tpu.dot_dimension_numbers<[1], [0], [0], [1], [0, 0, 1, 1], [], []>} : vector<8x64xf32>, vector<64x256xf32>, vector<8x256xf32> -> vector<8x256xf32>
    %163 = arith.addf %161, %162 : vector<8x256xf32>
    %164 = arith.negf %163 : vector<8x256xf32>
    %165 = math.exp %164 : vector<8x256xf32>
    %cst_34 = arith.constant 1.000000e+00 : f32
    %166 = vector.broadcast %cst_34 : f32 to vector<8x256xf32>
    %167 = arith.addf %166, %165 : vector<8x256xf32>
    %168 = arith.divf %166, %167 : vector<8x256xf32>
    %169 = math.tanh %163 : vector<8x256xf32>
    %170 = vector.extract_strided_slice %168 {offsets = [0, 0], sizes = [8, 64], strides = [1, 1]} : vector<8x256xf32> to vector<8x64xf32>
    %171 = vector.extract_strided_slice %168 {offsets = [0, 64], sizes = [8, 64], strides = [1, 1]} : vector<8x256xf32> to vector<8x64xf32>
    %172 = vector.extract_strided_slice %169 {offsets = [0, 128], sizes = [8, 64], strides = [1, 1]} : vector<8x256xf32> to vector<8x64xf32>
    %173 = vector.extract_strided_slice %168 {offsets = [0, 192], sizes = [8, 64], strides = [1, 1]} : vector<8x256xf32> to vector<8x64xf32>
    %174 = arith.mulf %171, %146 : vector<8x64xf32>
    %175 = arith.mulf %170, %172 : vector<8x64xf32>
    %176 = arith.addf %174, %175 : vector<8x64xf32>
    %177 = math.tanh %176 : vector<8x64xf32>
    %178 = arith.mulf %173, %177 : vector<8x64xf32>
    %179 = vector.extract_strided_slice %178 {offsets = [0, 0], sizes = [8, 32], strides = [1, 1]} : vector<8x64xf32> to vector<8x32xf32>
    %180 = vector.extract_strided_slice %7 {offsets = [0, 0], sizes = [1, 32], strides = [1, 1]} : vector<1x64xf32> to vector<1x32xf32>
    %181 = vector.broadcast %180 : vector<1x32xf32> to vector<8x32xf32>
    %182 = arith.mulf %179, %181 : vector<8x32xf32>
    %cst_35 = arith.constant dense<0.000000e+00> : vector<8xf32>
    %183 = vector.multi_reduction <add>, %182, %cst_35 [1] : vector<8x32xf32> to vector<8xf32>
    %184 = vector.shape_cast %183 : vector<8xf32> to vector<8x1xf32>
    %185 = vector.extract_strided_slice %178 {offsets = [0, 32], sizes = [8, 32], strides = [1, 1]} : vector<8x64xf32> to vector<8x32xf32>
    %186 = vector.extract_strided_slice %7 {offsets = [0, 32], sizes = [1, 32], strides = [1, 1]} : vector<1x64xf32> to vector<1x32xf32>
    %187 = vector.broadcast %186 : vector<1x32xf32> to vector<8x32xf32>
    %188 = arith.mulf %185, %187 : vector<8x32xf32>
    %cst_36 = arith.constant dense<0.000000e+00> : vector<8xf32>
    %189 = vector.multi_reduction <add>, %188, %cst_36 [1] : vector<8x32xf32> to vector<8xf32>
    %190 = vector.shape_cast %189 : vector<8xf32> to vector<8x1xf32>
    %191 = vector.extract_strided_slice %5 {offsets = [48, 0], sizes = [8, 256], strides = [1, 1]} : vector<64x256xf32> to vector<8x256xf32>
    %cst_37 = arith.constant dense<0.000000e+00> : vector<8x256xf32>
    %192 = tpu.matmul %178, %6, %cst_37 {dimension_numbers = #tpu.dot_dimension_numbers<[1], [0], [0], [1], [0, 0, 1, 1], [], []>} : vector<8x64xf32>, vector<64x256xf32>, vector<8x256xf32> -> vector<8x256xf32>
    %193 = arith.addf %191, %192 : vector<8x256xf32>
    %194 = arith.negf %193 : vector<8x256xf32>
    %195 = math.exp %194 : vector<8x256xf32>
    %cst_38 = arith.constant 1.000000e+00 : f32
    %196 = vector.broadcast %cst_38 : f32 to vector<8x256xf32>
    %197 = arith.addf %196, %195 : vector<8x256xf32>
    %198 = arith.divf %196, %197 : vector<8x256xf32>
    %199 = math.tanh %193 : vector<8x256xf32>
    %200 = vector.extract_strided_slice %198 {offsets = [0, 0], sizes = [8, 64], strides = [1, 1]} : vector<8x256xf32> to vector<8x64xf32>
    %201 = vector.extract_strided_slice %198 {offsets = [0, 64], sizes = [8, 64], strides = [1, 1]} : vector<8x256xf32> to vector<8x64xf32>
    %202 = vector.extract_strided_slice %199 {offsets = [0, 128], sizes = [8, 64], strides = [1, 1]} : vector<8x256xf32> to vector<8x64xf32>
    %203 = vector.extract_strided_slice %198 {offsets = [0, 192], sizes = [8, 64], strides = [1, 1]} : vector<8x256xf32> to vector<8x64xf32>
    %204 = arith.mulf %201, %176 : vector<8x64xf32>
    %205 = arith.mulf %200, %202 : vector<8x64xf32>
    %206 = arith.addf %204, %205 : vector<8x64xf32>
    %207 = math.tanh %206 : vector<8x64xf32>
    %208 = arith.mulf %203, %207 : vector<8x64xf32>
    %209 = vector.extract_strided_slice %208 {offsets = [0, 0], sizes = [8, 32], strides = [1, 1]} : vector<8x64xf32> to vector<8x32xf32>
    %210 = vector.extract_strided_slice %7 {offsets = [0, 0], sizes = [1, 32], strides = [1, 1]} : vector<1x64xf32> to vector<1x32xf32>
    %211 = vector.broadcast %210 : vector<1x32xf32> to vector<8x32xf32>
    %212 = arith.mulf %209, %211 : vector<8x32xf32>
    %cst_39 = arith.constant dense<0.000000e+00> : vector<8xf32>
    %213 = vector.multi_reduction <add>, %212, %cst_39 [1] : vector<8x32xf32> to vector<8xf32>
    %214 = vector.shape_cast %213 : vector<8xf32> to vector<8x1xf32>
    %215 = vector.extract_strided_slice %208 {offsets = [0, 32], sizes = [8, 32], strides = [1, 1]} : vector<8x64xf32> to vector<8x32xf32>
    %216 = vector.extract_strided_slice %7 {offsets = [0, 32], sizes = [1, 32], strides = [1, 1]} : vector<1x64xf32> to vector<1x32xf32>
    %217 = vector.broadcast %216 : vector<1x32xf32> to vector<8x32xf32>
    %218 = arith.mulf %215, %217 : vector<8x32xf32>
    %cst_40 = arith.constant dense<0.000000e+00> : vector<8xf32>
    %219 = vector.multi_reduction <add>, %218, %cst_40 [1] : vector<8x32xf32> to vector<8xf32>
    %220 = vector.shape_cast %219 : vector<8xf32> to vector<8x1xf32>
    %221 = vector.extract_strided_slice %5 {offsets = [56, 0], sizes = [8, 256], strides = [1, 1]} : vector<64x256xf32> to vector<8x256xf32>
    %cst_41 = arith.constant dense<0.000000e+00> : vector<8x256xf32>
    %222 = tpu.matmul %208, %6, %cst_41 {dimension_numbers = #tpu.dot_dimension_numbers<[1], [0], [0], [1], [0, 0, 1, 1], [], []>} : vector<8x64xf32>, vector<64x256xf32>, vector<8x256xf32> -> vector<8x256xf32>
    %223 = arith.addf %221, %222 : vector<8x256xf32>
    %224 = arith.negf %223 : vector<8x256xf32>
    %225 = math.exp %224 : vector<8x256xf32>
    %cst_42 = arith.constant 1.000000e+00 : f32
    %226 = vector.broadcast %cst_42 : f32 to vector<8x256xf32>
    %227 = arith.addf %226, %225 : vector<8x256xf32>
    %228 = arith.divf %226, %227 : vector<8x256xf32>
    %229 = math.tanh %223 : vector<8x256xf32>
    %230 = vector.extract_strided_slice %228 {offsets = [0, 0], sizes = [8, 64], strides = [1, 1]} : vector<8x256xf32> to vector<8x64xf32>
    %231 = vector.extract_strided_slice %228 {offsets = [0, 64], sizes = [8, 64], strides = [1, 1]} : vector<8x256xf32> to vector<8x64xf32>
    %232 = vector.extract_strided_slice %229 {offsets = [0, 128], sizes = [8, 64], strides = [1, 1]} : vector<8x256xf32> to vector<8x64xf32>
    %233 = vector.extract_strided_slice %228 {offsets = [0, 192], sizes = [8, 64], strides = [1, 1]} : vector<8x256xf32> to vector<8x64xf32>
    %234 = arith.mulf %231, %206 : vector<8x64xf32>
    %235 = arith.mulf %230, %232 : vector<8x64xf32>
    %236 = arith.addf %234, %235 : vector<8x64xf32>
    %237 = math.tanh %236 : vector<8x64xf32>
    %238 = arith.mulf %233, %237 : vector<8x64xf32>
    %239 = vector.extract_strided_slice %238 {offsets = [0, 0], sizes = [8, 32], strides = [1, 1]} : vector<8x64xf32> to vector<8x32xf32>
    %240 = vector.extract_strided_slice %7 {offsets = [0, 0], sizes = [1, 32], strides = [1, 1]} : vector<1x64xf32> to vector<1x32xf32>
    %241 = vector.broadcast %240 : vector<1x32xf32> to vector<8x32xf32>
    %242 = arith.mulf %239, %241 : vector<8x32xf32>
    %cst_43 = arith.constant dense<0.000000e+00> : vector<8xf32>
    %243 = vector.multi_reduction <add>, %242, %cst_43 [1] : vector<8x32xf32> to vector<8xf32>
    %244 = vector.shape_cast %243 : vector<8xf32> to vector<8x1xf32>
    %245 = vector.extract_strided_slice %238 {offsets = [0, 32], sizes = [8, 32], strides = [1, 1]} : vector<8x64xf32> to vector<8x32xf32>
    %246 = vector.extract_strided_slice %7 {offsets = [0, 32], sizes = [1, 32], strides = [1, 1]} : vector<1x64xf32> to vector<1x32xf32>
    %247 = vector.broadcast %246 : vector<1x32xf32> to vector<8x32xf32>
    %248 = arith.mulf %245, %247 : vector<8x32xf32>
    %cst_44 = arith.constant dense<0.000000e+00> : vector<8xf32>
    %249 = vector.multi_reduction <add>, %248, %cst_44 [1] : vector<8x32xf32> to vector<8xf32>
    %250 = vector.shape_cast %249 : vector<8xf32> to vector<8x1xf32>
    %251 = arith.addf %34, %250 : vector<8x1xf32>
    %252 = vector.broadcast %8 : vector<1x1xf32> to vector<8x1xf32>
    %253 = arith.addf %251, %252 : vector<8x1xf32>
    %254 = arith.addf %64, %220 : vector<8x1xf32>
    %255 = vector.broadcast %8 : vector<1x1xf32> to vector<8x1xf32>
    %256 = arith.addf %254, %255 : vector<8x1xf32>
    %257 = arith.addf %94, %190 : vector<8x1xf32>
    %258 = vector.broadcast %8 : vector<1x1xf32> to vector<8x1xf32>
    %259 = arith.addf %257, %258 : vector<8x1xf32>
    %260 = arith.addf %124, %160 : vector<8x1xf32>
    %261 = vector.broadcast %8 : vector<1x1xf32> to vector<8x1xf32>
    %262 = arith.addf %260, %261 : vector<8x1xf32>
    %263 = arith.addf %154, %130 : vector<8x1xf32>
    %264 = vector.broadcast %8 : vector<1x1xf32> to vector<8x1xf32>
    %265 = arith.addf %263, %264 : vector<8x1xf32>
    %266 = arith.addf %184, %100 : vector<8x1xf32>
    %267 = vector.broadcast %8 : vector<1x1xf32> to vector<8x1xf32>
    %268 = arith.addf %266, %267 : vector<8x1xf32>
    %269 = arith.addf %214, %70 : vector<8x1xf32>
    %270 = vector.broadcast %8 : vector<1x1xf32> to vector<8x1xf32>
    %271 = arith.addf %269, %270 : vector<8x1xf32>
    %272 = arith.addf %244, %40 : vector<8x1xf32>
    %273 = vector.broadcast %8 : vector<1x1xf32> to vector<8x1xf32>
    %274 = arith.addf %272, %273 : vector<8x1xf32>
    %275 = tpu.concatenate %253, %256, %259, %262, %265, %268, %271, %274 in 1 : vector<8x1xf32>, vector<8x1xf32>, vector<8x1xf32>, vector<8x1xf32>, vector<8x1xf32>, vector<8x1xf32>, vector<8x1xf32>, vector<8x1xf32> -> vector<8x8xf32>
    %c0_45 = arith.constant 0 : index
    %c0_46 = arith.constant 0 : index
    %c0_47 = arith.constant 0 : index
    %276 = vector.load %arg6[%c0_45, %c0_46, %c0_47] : memref<2x8x8xf32, #tpu.memory_space<vmem>>, vector<1x8x8xf32>
    %277 = vector.shape_cast %276 : vector<1x8x8xf32> to vector<8x8xf32>
    %278 = vector.shape_cast %275 : vector<8x8xf32> to vector<1x8x8xf32>
    tpu.vector_store %arg6[%c0_45, %c0_46, %c0_47], %278 {strides = array<i32>} : memref<2x8x8xf32, #tpu.memory_space<vmem>>, vector<1x8x8xf32>,
    %279 = arith.negf %275 : vector<8x8xf32>
    %280 = math.exp %279 : vector<8x8xf32>
    %cst_48 = arith.constant 1.000000e+00 : f32
    %281 = vector.broadcast %cst_48 : f32 to vector<8x8xf32>
    %282 = arith.addf %281, %280 : vector<8x8xf32>
    %283 = arith.divf %281, %282 : vector<8x8xf32>
    %c1 = arith.constant 1 : index
    %c0_49 = arith.constant 0 : index
    %c0_50 = arith.constant 0 : index
    %284 = vector.load %arg6[%c1, %c0_49, %c0_50] : memref<2x8x8xf32, #tpu.memory_space<vmem>>, vector<1x8x8xf32>
    %285 = vector.shape_cast %284 : vector<1x8x8xf32> to vector<8x8xf32>
    %286 = vector.shape_cast %283 : vector<8x8xf32> to vector<1x8x8xf32>
    tpu.vector_store %arg6[%c1, %c0_49, %c0_50], %286 {strides = array<i32>} : memref<2x8x8xf32, #tpu.memory_space<vmem>>, vector<1x8x8xf32>,
    return
  }
}

</mosaic_0001>

<bundles_post_ra>
// kernel: simple_bilstm_scores.1
= control target key start
LH: loop header
LB: loop body
LE: loop exit
PB: predicated region body
PF: predicated region fallthrough
CT: control target
= control target key end

     0   :  { %v1359_v3 = vmov 0.0   ;;  %vm61_vm0 = vcmask 523264   ;;  %v51_v34 = vlaneseq  ;;  %vm328_vm1 = vcmask 261120   ;;  %s1363_s8 = smov 3   ;;  %s1364_s9 = smov 4   ;;  %s1887_s1 = inlined_call_operand.vmem [shape: f32[64,256], index: 1, kind: input, shape index: {}]   ;;  %s1888_s3 = inlined_call_operand.vmem [shape: f32[64,256], index: 3, kind: input, shape index: {}]   ;;  %s1889_s0 = inlined_call_operand.vmem [shape: f32[64,64], index: 0, kind: input, shape index: {}]   ;;  %s1890_s2 = inlined_call_operand.vmem [shape: f32[1,256], index: 2, kind: input, shape index: {}]   ;;  %s1891_s4 = inlined_call_operand.vmem [shape: f32[1,64], index: 4, kind: input, shape index: {}]   ;;  %s1892_s5 = inlined_call_operand.<no memory space> [shape: f32[1,1], index: 5, kind: input, shape index: {}]   ;;  %s1893_s6 = inlined_call_operand.vmem [shape: f32[2,8,8], index: 6, kind: output, shape index: {}]  }
   0x1   :  { %v48_v0 = vld [vmem:[%s1887_s1 + $0x78] sm:$0xff]  ;;  %v47_v2 = vld [vmem:[%s1887_s1 + $0x70] sm:$0xff]  ;;  %150 = vmatprep.mubr.f32.mxu0 %v1359_v3  ;;  %284 = vmatprep.mubr.f32.mxu1 %v1359_v3  ;;  %v46_v5 = vld [vmem:[%s1887_s1 + $0x68] sm:$0xff]  ;;  %s1365_s10 = smov 6   ;;  %s1366_s11 = smov 1   ;;  %vm1186_vm2 = vcmask 7168  }
   0x2   :  { %v1410_v1 = vld [vmem:[%s1888_s3 + $0x78] sm:$0xff]  ;;  %102 = vmatprep.subr.mxu0 %v48_v0  ;;  %v1421_v4 = vld [vmem:[%s1888_s3 + $0x70] sm:$0xff]  ;;  %v1429_v6 = vld [vmem:[%s1888_s3 + $0x68] sm:$0xff]  ;;  %v52_v35 = vshrl.u32 %v51_v34, 7  ;;  %s1367_s12 = smov 5   ;;  %s1368_s13 = smov 7  }
   0x3   :  { %236 = vmatprep.subr.mxu1 %v1410_v1  ;;  %103 = vmatpush1.msra.mxu0 %v47_v2  ;;  %v45_v7 = vld [vmem:[%s1887_s1 + $0x60] sm:$0xff]  ;;  %v44_v9 = vld [vmem:[%s1887_s1 + $0x58] sm:$0xff]  ;;  %v43_v11 = vld [vmem:[%s1887_s1 + $0x50] sm:$0xff]  ;;  %vm1188_vm3 = vcmask 15360   ;;  %vm1190_vm4 = vcmask 23552   ;;  %vm1192_vm5 = vcmask 31744  }
   0x4   :  { %237 = vmatpush1.msra.mxu1 %v1421_v4  ;;  %v1438_v8 = vld [vmem:[%s1888_s3 + $0x60] sm:$0xff]  ;;  %104 = vmatprep.subr.mxu0 %v46_v5  ;;  %v1447_v10 = vld [vmem:[%s1888_s3 + $0x58] sm:$0xff]  ;;  %v1455_v12 = vld [vmem:[%s1888_s3 + $0x50] sm:$0xff]  ;;  %v53_v36 = vsub.s32 0, %v52_v35  ;;  %v57_v44 = vsub.s32 1, %v52_v35  ;;  %vm1194_vm6 = vcmask 39936  }
   0x5   :  { %238 = vmatprep.subr.mxu1 %v1429_v6  ;;  %105 = vmatpush1.msra.mxu0 %v45_v7  ;;  %v42_v13 = vld [vmem:[%s1887_s1 + $0x48] sm:$0xff]  ;;  %v41_v15 = vld [vmem:[%s1887_s1 + $0x40] sm:$0xff]  ;;  %v40_v17 = vld [vmem:[%s1887_s1 + $0x38] sm:$0xff]  ;;  %vm1196_vm7 = vcmask 48128   ;;  %vm1198_vm8 = vcmask 56320   ;;  %vm1200_vm9 = vcmask 64512  }
   0x6   :  { %239 = vmatpush1.msra.mxu1 %v1438_v8  ;;  %v1464_v14 = vld [vmem:[%s1888_s3 + $0x48] sm:$0xff]  ;;  %106 = vmatprep.subr.mxu0 %v44_v9  ;;  %v1473_v16 = vld [vmem:[%s1888_s3 + $0x40] sm:$0xff]  ;;  %v1482_v18 = vld [vmem:[%s1888_s3 + $0x38] sm:$0xff] }
   0x7   :  { %240 = vmatprep.subr.mxu1 %v1447_v10  ;;  %107 = vmatpush1.msra.mxu0 %v43_v11  ;;  %v39_v19 = vld [vmem:[%s1887_s1 + $0x30] sm:$0xff]  ;;  %v38_v21 = vld [vmem:[%s1887_s1 + $0x28] sm:$0xff]  ;;  %v37_v23 = vld [vmem:[%s1887_s1 + $0x20] sm:$0xff] }
   0x8   :  { %241 = vmatpush1.msra.mxu1 %v1455_v12  ;;  %108 = vmatprep.subr.mxu0 %v42_v13  ;;  %v1491_v20 = vld [vmem:[%s1888_s3 + $0x30] sm:$0xff]  ;;  %v1500_v22 = vld [vmem:[%s1888_s3 + $0x28] sm:$0xff]  ;;  %v1509_v24 = vld [vmem:[%s1888_s3 + $0x20] sm:$0xff] }
   0x9   :  { %242 = vmatprep.subr.mxu1 %v1464_v14  ;;  %109 = vmatpush1.msra.mxu0 %v41_v15  ;;  %v36_v25 = vld [vmem:[%s1887_s1 + $0x18] sm:$0xff]  ;;  %v35_v27 = vld [vmem:[%s1887_s1 + $0x10] sm:$0xff]  ;;  %v34_v29 = vld [vmem:[%s1887_s1 + $0x8] sm:$0xff] }
   0xa   :  { %243 = vmatpush1.msra.mxu1 %v1473_v16  ;;  %110 = vmatprep.subr.mxu0 %v40_v17  ;;  %v1518_v26 = vld [vmem:[%s1888_s3 + $0x18] sm:$0xff]  ;;  %v1527_v28 = vld [vmem:[%s1888_s3 + $0x10] sm:$0xff]  ;;  %v1536_v30 = vld [vmem:[%s1888_s3 + $0x8] sm:$0xff] }
   0xb   :  { %244 = vmatprep.subr.mxu1 %v1482_v18  ;;  %111 = vmatpush1.msra.mxu0 %v39_v19  ;;  %v33_v31 = vld [vmem:[%s1887_s1] sm:$0xff]  ;;  %v26_v55 = vld [vmem:[%s1889_s0 + $0x8] sm:$0xff]  ;;  %v28_v34 = vld [vmem:[%s1889_s0 + $0x18] sm:$0xff] }
   0xc   :  { %245 = vmatpush1.msra.mxu1 %v1491_v20  ;;  %112 = vmatprep.subr.mxu0 %v38_v21  ;;  %v1545_v32 = vld [vmem:[%s1888_s3] sm:$0xff] }
   0xd   :  { %246 = vmatprep.subr.mxu1 %v1500_v22  ;;  %113 = vmatpush1.msra.mxu0 %v37_v23  ;;  %v25_v33 = vld [vmem:[%s1889_s0] sm:$0xff] }
   0xe   :  { %247 = vmatpush1.msra.mxu1 %v1509_v24  ;;  %114 = vmatprep.subr.mxu0 %v36_v25  ;;  %v49_v37 = vld [vmem:[%s1890_s2] sm:$0x3]  ;;  %s1360_s2 = smov 64  }
   0xf   :  { %248 = vmatprep.subr.mxu1 %v1518_v26  ;;  %115 = vmatpush1.msra.mxu0 %v35_v27  ;;  %v1594_v38 = vrot.slane %v49_v37, %v53_v36  ;;  %v1597_v45 = vrot.slane %v49_v37, %v57_v44  ;;  %v29_v35 = vld [vmem:[%s1889_s0 + $0x20] sm:$0xff]  ;;  %v30_v36 = vld [vmem:[%s1889_s0 + $0x28] sm:$0xff]  ;;  %v31_v37 = vld [vmem:[%s1889_s0 + $0x30] sm:$0xff] }
  0x10   :  { %249 = vmatpush1.msra.mxu1 %v1527_v28  ;;  %116 = vmatprep.subr.mxu0 %v34_v29 }
  0x11   :  { %250 = vmatprep.subr.mxu1 %v1536_v30  ;;  %117 = vmatpush1.msra.mxu0 %v33_v31 }
  0x12   :  { %251 = vmatpush1.msra.mxu1 %v1545_v32  ;;  %1214 = vmatmul.mubr.msk.f32.vlgmr.msra.gmra.mxu0 %vm61_vm0, %v25_v33  ;;  %v27_v33 = vld [vmem:[%s1889_s0 + $0x10] sm:$0xff] }
  0x13   :  { %285 = vmatmul.mubr.f32.vlgmr.msra.gmra.mxu1 %v1359_v3  ;;  %359 = vmatprep.subr.mxu1 %v1410_v1 }
  0x14   :  { %156 = vmatprep.mubr.f32.mxu0 %v1359_v3  ;;  %360 = vmatpush1.msra.mxu1 %v1421_v4 }
  0x15   :  { %407 = vmatprep.mubr.f32.mxu1 %v1359_v3  ;;  %361 = vmatprep.subr.mxu1 %v1429_v6 }
  0x16   :  { %473 = vmatprep.subr.mxu0 %v1410_v1  ;;  %362 = vmatpush1.msra.mxu1 %v1438_v8 }
  0x17   :  { %474 = vmatpush1.msra.mxu0 %v1421_v4  ;;  %363 = vmatprep.subr.mxu1 %v1447_v10 }
  0x18   :  { %475 = vmatprep.subr.mxu0 %v1429_v6  ;;  %364 = vmatpush1.msra.mxu1 %v1455_v12 }
  0x19   :  { %476 = vmatpush1.msra.mxu0 %v1438_v8  ;;  %365 = vmatprep.subr.mxu1 %v1464_v14 }
  0x1a   :  { %477 = vmatprep.subr.mxu0 %v1447_v10  ;;  %366 = vmatpush1.msra.mxu1 %v1473_v16 }
  0x1b   :  { %478 = vmatpush1.msra.mxu0 %v1455_v12  ;;  %367 = vmatprep.subr.mxu1 %v1482_v18 }
  0x1c   :  { %479 = vmatprep.subr.mxu0 %v1464_v14  ;;  %368 = vmatpush1.msra.mxu1 %v1491_v20 }
  0x1d   :  { %480 = vmatpush1.msra.mxu0 %v1473_v16  ;;  %369 = vmatprep.subr.mxu1 %v1500_v22 }
  0x1e   :  { %481 = vmatprep.subr.mxu0 %v1482_v18  ;;  %370 = vmatpush1.msra.mxu1 %v1509_v24 }
  0x1f   :  { %482 = vmatpush1.msra.mxu0 %v1491_v20  ;;  %371 = vmatprep.subr.mxu1 %v1518_v26 }
  0x20   :  { %483 = vmatprep.subr.mxu0 %v1500_v22  ;;  %372 = vmatpush1.msra.mxu1 %v1527_v28 }
  0x21   :  { %484 = vmatpush1.msra.mxu0 %v1509_v24  ;;  %373 = vmatprep.subr.mxu1 %v1536_v30 }
  0x22   :  { %485 = vmatprep.subr.mxu0 %v1518_v26  ;;  %374 = vmatpush1.msra.mxu1 %v1545_v32 }
  0x23   :  { %486 = vmatpush1.msra.mxu0 %v1527_v28  ;;  %587 = vmatprep.subr.mxu1 %v1410_v1 }
  0x24   :  { %487 = vmatprep.subr.mxu0 %v1536_v30  ;;  %1215 = vmatmul.mubr.msk.f32.gmra.mxu0 %vm61_vm0, %v26_v55 }
  0x25   :  { %488 = vmatpush1.msra.mxu0 %v1545_v32  ;;  %162 = vmatprep.mubr.f32.mxu0 %v1359_v3 }
  0x26   :  { %701 = vmatprep.subr.mxu0 %v1410_v1 }
  0x28   :  { %1216 = vmatmul.mubr.msk.f32.gmra.mxu0 %vm61_vm0, %v27_v33 }
  0x29   :  { %168 = vmatprep.mubr.f32.mxu0 %v1359_v3 }
  0x2c   :  { %1217 = vmatmul.mubr.msk.f32.gmra.mxu0 %vm61_vm0, %v28_v34 }
  0x2d   :  { %174 = vmatprep.mubr.f32.mxu0 %v1359_v3 }
  0x30   :  { %1218 = vmatmul.mubr.msk.f32.gmra.mxu0 %vm61_vm0, %v29_v35 }
  0x31   :  { %180 = vmatprep.mubr.f32.mxu0 %v1359_v3 }
  0x34   :  { %1219 = vmatmul.mubr.msk.f32.gmra.mxu0 %vm61_vm0, %v30_v36 }
  0x35   :  { %186 = vmatprep.mubr.f32.mxu0 %v1359_v3 }
  0x38   :  { %1220 = vmatmul.mubr.msk.f32.gmra.mxu0 %vm61_vm0, %v31_v37 }
  0x39   :  { %192 = vmatprep.mubr.f32.mxu0 %v1359_v3 }
  0xd2   :  { %v152_v39 = vpop.f32.mrf.mxu0 }
  0xd3   :  { %v153_v40 = vadd.f32 %v152_v39, %v1594_v38  ;;  %v286_v41 = vpop.f32.mrf.mxu1  ;;  %v32_v39 = vld [vmem:[%s1889_s0 + $0x38] sm:$0xff] }
  0xd4   :  { %v154_v46 = vpop.f32.mrf.mxu0  ;;  %1221 = vmatmul.mubr.msk.f32.gmra.mxu0 %vm61_vm0, %v32_v39 }
  0xd5   :  { %v291_v42 = vadd.f32 %v286_v41, %v153_v40  ;;  %v155_v47 = vadd.f32 %v154_v46, %v1597_v45  ;;  %v288_v48 = vpop.f32.mrf.mxu1  ;;  %521 = vmatprep.mubr.f32.mxu0 %v1359_v3 }
  0xd7   :  { %v1222_v43 = vmul.f32 -1.442695, %v291_v42  ;;  %v292_v49 = vadd.f32 %v288_v48, %v155_v47 }
  0xd9   :  { %1259 = vpow2.f32 %v1222_v43  ;;  %v1223_v56 = vmul.f32 -1.442695, %v292_v49 }
  0xda   :  { %1261 = vtanh.f32 %v292_v49 }
  0xe4   :  { %v158_v5 = vpop.f32.mrf.mxu0 }
  0xe5   :  { %v159_v7 = vadd.f32 %v158_v5, %v1594_v38 }
  0xe6   :  { %v1260_v50 = vpop.eup %1259  ;;  %v160_v15 = vpop.f32.mrf.mxu0 }
  0xe7   :  { %v299_v51 = vadd.f32 1.0, %v1260_v50  ;;  %v1262_v52 = vpop.eup %1261  ;;  %v161_v19 = vadd.f32 %v160_v15, %v1597_v45 }
  0xe9   :  { %1263 = vrcp.f32 %v299_v51  ;;  %v164_v51 = vpop.f32.mrf.mxu0 }
  0xea   :  { %1265 = vpow2.f32 %v1223_v56 }
  0xf6   :  { %v1264_v53 = vpop.eup %1263 }
  0xf7   :  { %v307_v54 = vmul.f32 %v1264_v53, %v1262_v52  ;;  %v1266_v57 = vpop.eup %1265  ;;  %v306_v59 = vmul.f32 0.0, %v1264_v53  ;;  %v166_v52 = vpop.f32.mrf.mxu0 }
  0xf8   :  { %v300_v58 = vadd.f32 1.0, %v1266_v57 }
  0xf9   :  { %309 = vrot.lane.b32.xlu0 %v307_v54, %s1360_s2  ;;  %v170_v53 = vpop.f32.mrf.mxu0 }
  0xfa   :  { %1267 = vrcp.f32 %v300_v58 }
  0xfb   :  { %v1687_v54 = vpop.f32.mrf.mxu0 }
  0xfd   :  { %v1689_v55 = vpop.f32.mrf.mxu0 }
  0xff   :  { %v1691_v56 = vpop.f32.mrf.mxu0 }
 0x101   :  { %v1693_v57 = vpop.f32.mrf.mxu0 }
 0x103   :  { %v1695_v58 = vpop.f32.mrf.mxu0 }
 0x107   :  { %v1268_v62 = vpop.eup %1267 }
 0x16b   :  { %v310_v60 = vpop.permute.xlu0 %309 }
 0x16c   :  { %v1606_v61 = vadd.f32 %v310_v60, %v306_v59  ;;  %v1697_v59 = vpop.f32.mrf.mxu0 }
 0x16e   :  { %1269 = vtanh.f32 %v1606_v61  ;;  %v1699_v60 = vpop.f32.mrf.mxu0 }
 0x17b   :  { %v1270_v63 = vpop.eup %1269 }
 0x17c   :  { %v1609_v0 = vmul.f32 %v1270_v63, %v1268_v62  ;;  %v165_v63 = vadd.f32 %v164_v51, %v1594_v38 }
 0x17e   :  { %339 = vrot.lane.b32.xlu0 %v1609_v0, %s1360_s2 }
 0x1f0   :  { %v340_v2 = vpop.permute.xlu0 %339 }
 0x1f1   :  { %1225 = vmatmul.mubr.msk.f32.vlgmr.msra.gmra.mxu1 %vm61_vm0, %v340_v2 }
 0x1f2   :  { %588 = vmatpush1.msra.mxu1 %v1421_v4  ;;  %635 = vmatprep.mubr.f32.mxu1 %v1359_v3 }
 0x1f3   :  { %589 = vmatprep.subr.mxu1 %v1429_v6 }
 0x1f4   :  { %590 = vmatpush1.msra.mxu1 %v1438_v8 }
 0x1f5   :  { %591 = vmatprep.subr.mxu1 %v1447_v10 }
 0x1f6   :  { %592 = vmatpush1.msra.mxu1 %v1455_v12 }
 0x1f7   :  { %593 = vmatprep.subr.mxu1 %v1464_v14 }
 0x1f8   :  { %594 = vmatpush1.msra.mxu1 %v1473_v16 }
 0x1f9   :  { %595 = vmatprep.subr.mxu1 %v1482_v18 }
 0x1fa   :  { %596 = vmatpush1.msra.mxu1 %v1491_v20 }
 0x1fb   :  { %597 = vmatprep.subr.mxu1 %v1500_v22 }
 0x1fc   :  { %598 = vmatpush1.msra.mxu1 %v1509_v24 }
 0x1fd   :  { %599 = vmatprep.subr.mxu1 %v1518_v26 }
 0x1fe   :  { %600 = vmatpush1.msra.mxu1 %v1527_v28 }
 0x1ff   :  { %601 = vmatprep.subr.mxu1 %v1536_v30 }
 0x200   :  { %602 = vmatpush1.msra.mxu1 %v1545_v32 }
 0x201   :  { %815 = vmatprep.subr.mxu1 %v1410_v1 }
 0x2b1   :  { %v409_v9 = vpop.f32.mrf.mxu1 }
 0x2b2   :  { %v414_v11 = vadd.f32 %v409_v9, %v159_v7 }
 0x2b3   :  { %v411_v17 = vpop.f32.mrf.mxu1 }
 0x2b4   :  { %v1226_v13 = vmul.f32 -1.442695, %v414_v11  ;;  %v415_v21 = vadd.f32 %v411_v17, %v161_v19  ;;  %v167_v11 = vadd.f32 %v166_v52, %v1597_v45 }
 0x2b6   :  { %1271 = vpow2.f32 %v1226_v13  ;;  %v1227_v40 = vmul.f32 -1.442695, %v415_v21 }
 0x2b7   :  { %1273 = vtanh.f32 %v415_v21 }
 0x2c3   :  { %v1272_v23 = vpop.eup %1271 }
 0x2c4   :  { %v422_v25 = vadd.f32 1.0, %v1272_v23  ;;  %v1274_v27 = vpop.eup %1273 }
 0x2c6   :  { %1275 = vrcp.f32 %v422_v25 }
 0x2c7   :  { %1277 = vpow2.f32 %v1227_v40  ;;  %v171_v40 = vadd.f32 %v170_v53, %v1594_v38 }
 0x2d3   :  { %v1276_v29 = vpop.eup %1275 }
 0x2d4   :  { %v430_v31 = vmul.f32 %v1276_v29, %v1274_v27  ;;  %v1278_v41 = vpop.eup %1277  ;;  %v429_v43 = vmul.f32 %v1276_v29, %v1606_v61  ;;  %v1701_v61 = vpop.f32.mrf.mxu0 }
 0x2d5   :  { %v423_v42 = vadd.f32 1.0, %v1278_v41 }
 0x2d6   :  { %432 = vrot.lane.b32.xlu1 %v430_v31, %s1360_s2  ;;  %v1703_v62 = vpop.f32.mrf.mxu0 }
 0x2d7   :  { %1279 = vrcp.f32 %v423_v42 }
 0x2e4   :  { %v1280_v47 = vpop.eup %1279 }
 0x348   :  { %v433_v44 = vpop.permute.xlu1 %432 }
 0x349   :  { %v435_v46 = vadd.f32 %v433_v44, %v429_v43 }
 0x34b   :  { %1281 = vtanh.f32 %v435_v46 }
 0x358   :  { %v1282_v48 = vpop.eup %1281 }
 0x359   :  { %v1665_v49 = vmul.f32 %v1282_v48, %v1280_v47 }
 0x35b   :  { %453 = vrot.lane.b32.xlu1 %v1665_v49, %s1360_s2 }
 0x3cd   :  { %v454_v50 = vpop.permute.xlu1 %453 }
 0x3ce   :  { %1228 = vmatmul.mubr.msk.f32.vlgmr.msra.gmra.mxu0 %vm61_vm0, %v454_v50 }
 0x3cf   :  { %702 = vmatpush1.msra.mxu0 %v1421_v4  ;;  %749 = vmatprep.mubr.f32.mxu0 %v1359_v3 }
 0x3d0   :  { %703 = vmatprep.subr.mxu0 %v1429_v6 }
 0x3d1   :  { %704 = vmatpush1.msra.mxu0 %v1438_v8 }
 0x3d2   :  { %705 = vmatprep.subr.mxu0 %v1447_v10 }
 0x3d3   :  { %706 = vmatpush1.msra.mxu0 %v1455_v12 }
 0x3d4   :  { %707 = vmatprep.subr.mxu0 %v1464_v14 }
 0x3d5   :  { %708 = vmatpush1.msra.mxu0 %v1473_v16 }
 0x3d6   :  { %709 = vmatprep.subr.mxu0 %v1482_v18 }
 0x3d7   :  { %710 = vmatpush1.msra.mxu0 %v1491_v20 }
 0x3d8   :  { %711 = vmatprep.subr.mxu0 %v1500_v22 }
 0x3d9   :  { %712 = vmatpush1.msra.mxu0 %v1509_v24 }
 0x3da   :  { %713 = vmatprep.subr.mxu0 %v1518_v26 }
 0x3db   :  { %714 = vmatpush1.msra.mxu0 %v1527_v28 }
 0x3dc   :  { %715 = vmatprep.subr.mxu0 %v1536_v30 }
 0x3dd   :  { %716 = vmatpush1.msra.mxu0 %v1545_v32 }
 0x3de   :  { %929 = vmatprep.subr.mxu0 %v1410_v1 }
 0x48e   :  { %v523_v2 = vpop.f32.mrf.mxu0 }
 0x48f   :  { %v528_v5 = vadd.f32 %v523_v2, %v165_v63 }
 0x490   :  { %v525_v9 = vpop.f32.mrf.mxu0 }
 0x491   :  { %v1229_v7 = vmul.f32 -1.442695, %v528_v5  ;;  %v529_v13 = vadd.f32 %v525_v9, %v167_v11 }
 0x493   :  { %1283 = vpow2.f32 %v1229_v7  ;;  %v1230_v25 = vmul.f32 -1.442695, %v529_v13 }
 0x494   :  { %1285 = vtanh.f32 %v529_v13 }
 0x4a0   :  { %v1284_v15 = vpop.eup %1283 }
 0x4a1   :  { %v536_v17 = vadd.f32 1.0, %v1284_v15  ;;  %v1286_v19 = vpop.eup %1285 }
 0x4a3   :  { %1287 = vrcp.f32 %v536_v17  ;;  %v177_v17 = vadd.f32 %v1689_v55, %v1594_v38 }
 0x4a4   :  { %1289 = vpow2.f32 %v1230_v25 }
 0x4b0   :  { %v1288_v21 = vpop.eup %1287 }
 0x4b1   :  { %v544_v23 = vmul.f32 %v1288_v21, %v1286_v19  ;;  %v1290_v27 = vpop.eup %1289  ;;  %v543_v31 = vmul.f32 %v1288_v21, %v435_v46  ;;  %v173_v46 = vadd.f32 %v1687_v54, %v1597_v45 }
 0x4b2   :  { %v537_v29 = vadd.f32 1.0, %v1290_v27  ;;  %v179_v27 = vadd.f32 %v1691_v56, %v1597_v45 }
 0x4b3   :  { %546 = vrot.lane.b32.xlu0 %v544_v23, %s1360_s2 }
 0x4b4   :  { %1291 = vrcp.f32 %v537_v29 }
 0x4c1   :  { %v1292_v35 = vpop.eup %1291 }
 0x525   :  { %v547_v33 = vpop.permute.xlu0 %546 }
 0x526   :  { %v549_v34 = vadd.f32 %v547_v33, %v543_v31 }
 0x528   :  { %1293 = vtanh.f32 %v549_v34 }
 0x535   :  { %v1294_v36 = vpop.eup %1293 }
 0x536   :  { %v1708_v37 = vmul.f32 %v1294_v36, %v1292_v35 }
 0x538   :  { %567 = vrot.lane.b32.xlu1 %v1708_v37, %s1360_s2 }
 0x5aa   :  { %v568_v39 = vpop.permute.xlu1 %567 }
 0x5ab   :  { %1231 = vmatmul.mubr.msk.f32.vlgmr.msra.gmra.mxu1 %vm61_vm0, %v568_v39 }
 0x5ac   :  { %816 = vmatpush1.msra.mxu1 %v1421_v4  ;;  %863 = vmatprep.mubr.f32.mxu1 %v1359_v3 }
 0x5ad   :  { %817 = vmatprep.subr.mxu1 %v1429_v6 }
 0x5ae   :  { %818 = vmatpush1.msra.mxu1 %v1438_v8 }
 0x5af   :  { %819 = vmatprep.subr.mxu1 %v1447_v10 }
 0x5b0   :  { %820 = vmatpush1.msra.mxu1 %v1455_v12 }
 0x5b1   :  { %821 = vmatprep.subr.mxu1 %v1464_v14 }
 0x5b2   :  { %822 = vmatpush1.msra.mxu1 %v1473_v16 }
 0x5b3   :  { %823 = vmatprep.subr.mxu1 %v1482_v18 }
 0x5b4   :  { %824 = vmatpush1.msra.mxu1 %v1491_v20 }
 0x5b5   :  { %825 = vmatprep.subr.mxu1 %v1500_v22 }
 0x5b6   :  { %826 = vmatpush1.msra.mxu1 %v1509_v24 }
 0x5b7   :  { %827 = vmatprep.subr.mxu1 %v1518_v26 }
 0x5b8   :  { %828 = vmatpush1.msra.mxu1 %v1527_v28 }
 0x5b9   :  { %829 = vmatprep.subr.mxu1 %v1536_v30 }
 0x5ba   :  { %830 = vmatpush1.msra.mxu1 %v1545_v32 }
 0x5bb   :  { %1043 = vmatprep.subr.mxu1 %v1410_v1 }
 0x66b   :  { %v637_v41 = vpop.f32.mrf.mxu1 }
 0x66c   :  { %v642_v42 = vadd.f32 %v637_v41, %v171_v40 }
 0x66d   :  { %v639_v44 = vpop.f32.mrf.mxu1 }
 0x66e   :  { %v1232_v43 = vmul.f32 -1.442695, %v642_v42  ;;  %v643_v47 = vadd.f32 %v639_v44, %v173_v46 }
 0x670   :  { %1295 = vpow2.f32 %v1232_v43  ;;  %v1233_v1 = vmul.f32 -1.442695, %v643_v47 }
 0x671   :  { %1297 = vtanh.f32 %v643_v47 }
 0x67d   :  { %v1296_v48 = vpop.eup %1295 }
 0x67e   :  { %v650_v50 = vadd.f32 1.0, %v1296_v48  ;;  %v1298_v51 = vpop.eup %1297 }
 0x680   :  { %1299 = vrcp.f32 %v650_v50 }
 0x681   :  { %1301 = vpow2.f32 %v1233_v1 }
 0x68d   :  { %v1300_v52 = vpop.eup %1299 }
 0x68e   :  { %v658_v63 = vmul.f32 %v1300_v52, %v1298_v51  ;;  %v1302_v53 = vpop.eup %1301  ;;  %v657_v5 = vmul.f32 %v1300_v52, %v549_v34 }
 0x68f   :  { %v651_v2 = vadd.f32 1.0, %v1302_v53 }
 0x690   :  { %660 = vrot.lane.b32.xlu0 %v658_v63, %s1360_s2  ;;  %v189_v63 = vadd.f32 %v1697_v59, %v1594_v38  ;;  %v1224_v59 = vld [vmem:[%s1891_s4] ss:$0 sm:$0xff]  ;;  %s1361_s4 = smov 32  }
 0x691   :  { %1303 = vrcp.f32 %v651_v2 }
 0x69e   :  { %v1304_v54 = vpop.eup %1303 }
 0x702   :  { %v661_v7 = vpop.permute.xlu0 %660 }
 0x703   :  { %v663_v9 = vadd.f32 %v661_v7, %v657_v5  ;;  %v191_v7 = vadd.f32 %v1699_v60, %v1597_v45 }
 0x705   :  { %1305 = vtanh.f32 %v663_v9 }
 0x712   :  { %v1306_v11 = vpop.eup %1305 }
 0x713   :  { %v1734_v13 = vmul.f32 %v1306_v11, %v1304_v54 }
 0x715   :  { %681 = vrot.lane.b32.xlu1 %v1734_v13, %s1360_s2 }
 0x787   :  { %v682_v15 = vpop.permute.xlu1 %681 }
 0x788   :  { %1234 = vmatmul.mubr.msk.f32.vlgmr.msra.gmra.mxu0 %vm61_vm0, %v682_v15 }
 0x789   :  { %930 = vmatpush1.msra.mxu0 %v1421_v4  ;;  %977 = vmatprep.mubr.f32.mxu0 %v1359_v3 }
 0x78a   :  { %931 = vmatprep.subr.mxu0 %v1429_v6 }
 0x78b   :  { %932 = vmatpush1.msra.mxu0 %v1438_v8 }
 0x78c   :  { %933 = vmatprep.subr.mxu0 %v1447_v10 }
 0x78d   :  { %934 = vmatpush1.msra.mxu0 %v1455_v12 }
 0x78e   :  { %935 = vmatprep.subr.mxu0 %v1464_v14 }
 0x78f   :  { %936 = vmatpush1.msra.mxu0 %v1473_v16 }
 0x790   :  { %937 = vmatprep.subr.mxu0 %v1482_v18 }
 0x791   :  { %938 = vmatpush1.msra.mxu0 %v1491_v20 }
 0x792   :  { %939 = vmatprep.subr.mxu0 %v1500_v22 }
 0x793   :  { %940 = vmatpush1.msra.mxu0 %v1509_v24 }
 0x794   :  { %941 = vmatprep.subr.mxu0 %v1518_v26 }
 0x795   :  { %942 = vmatpush1.msra.mxu0 %v1527_v28 }
 0x796   :  { %943 = vmatprep.subr.mxu0 %v1536_v30 }
 0x797   :  { %944 = vmatpush1.msra.mxu0 %v1545_v32 }
 0x848   :  { %v751_v19 = vpop.f32.mrf.mxu0 }
 0x849   :  { %v756_v21 = vadd.f32 %v751_v19, %v177_v17 }
 0x84a   :  { %v753_v25 = vpop.f32.mrf.mxu0 }
 0x84b   :  { %v1235_v23 = vmul.f32 -1.442695, %v756_v21  ;;  %v757_v29 = vadd.f32 %v753_v25, %v179_v27 }
 0x84d   :  { %1307 = vpow2.f32 %v1235_v23  ;;  %v1236_v39 = vmul.f32 -1.442695, %v757_v29 }
 0x84e   :  { %1309 = vtanh.f32 %v757_v29 }
 0x85a   :  { %v1308_v31 = vpop.eup %1307 }
 0x85b   :  { %v764_v33 = vadd.f32 1.0, %v1308_v31  ;;  %v1310_v34 = vpop.eup %1309 }
 0x85d   :  { %1311 = vrcp.f32 %v764_v33 }
 0x85e   :  { %1313 = vpow2.f32 %v1236_v39 }
 0x86a   :  { %v1312_v35 = vpop.eup %1311 }
 0x86b   :  { %v772_v36 = vmul.f32 %v1312_v35, %v1310_v34  ;;  %v1314_v55 = vpop.eup %1313  ;;  %v771_v41 = vmul.f32 %v1312_v35, %v663_v9 }
 0x86c   :  { %v765_v40 = vadd.f32 1.0, %v1314_v55 }
 0x86d   :  { %774 = vrot.lane.b32.xlu0 %v772_v36, %s1360_s2 }
 0x86e   :  { %1315 = vrcp.f32 %v765_v40 }
 0x87b   :  { %v1316_v56 = vpop.eup %1315 }
 0x8df   :  { %v775_v42 = vpop.permute.xlu0 %774 }
 0x8e0   :  { %v777_v43 = vadd.f32 %v775_v42, %v771_v41 }
 0x8e2   :  { %1317 = vtanh.f32 %v777_v43 }
 0x8ef   :  { %v1318_v44 = vpop.eup %1317 }
 0x8f0   :  { %v1760_v46 = vmul.f32 %v1318_v44, %v1316_v56 }
 0x8f2   :  { %795 = vrot.lane.b32.xlu1 %v1760_v46, %s1360_s2 }
 0x964   :  { %v796_v47 = vpop.permute.xlu1 %795 }
 0x965   :  { %1237 = vmatmul.mubr.msk.f32.vlgmr.msra.gmra.mxu1 %vm61_vm0, %v796_v47 }
 0x966   :  { %1044 = vmatpush1.msra.mxu1 %v1421_v4  ;;  %1091 = vmatprep.mubr.f32.mxu1 %v1359_v3  ;;  %v183_v3 = vadd.f32 %v1693_v57, %v1594_v38 }
 0x967   :  { %1045 = vmatprep.subr.mxu1 %v1429_v6 }
 0x968   :  { %1046 = vmatpush1.msra.mxu1 %v1438_v8 }
 0x969   :  { %1047 = vmatprep.subr.mxu1 %v1447_v10 }
 0x96a   :  { %1048 = vmatpush1.msra.mxu1 %v1455_v12  ;;  %v185_v12 = vadd.f32 %v1695_v58, %v1597_v45 }
 0x96b   :  { %1049 = vmatprep.subr.mxu1 %v1464_v14 }
 0x96c   :  { %1050 = vmatpush1.msra.mxu1 %v1473_v16 }
 0x96d   :  { %1051 = vmatprep.subr.mxu1 %v1482_v18 }
 0x96e   :  { %1052 = vmatpush1.msra.mxu1 %v1491_v20 }
 0x96f   :  { %1053 = vmatprep.subr.mxu1 %v1500_v22 }
 0x970   :  { %1054 = vmatpush1.msra.mxu1 %v1509_v24 }
 0x971   :  { %1055 = vmatprep.subr.mxu1 %v1518_v26 }
 0x972   :  { %1056 = vmatpush1.msra.mxu1 %v1527_v28 }
 0x973   :  { %1057 = vmatprep.subr.mxu1 %v1536_v30 }
 0x974   :  { %1058 = vmatpush1.msra.mxu1 %v1545_v32 }
 0xa25   :  { %v865_v4 = vpop.f32.mrf.mxu1 }
 0xa26   :  { %v870_v6 = vadd.f32 %v865_v4, %v183_v3 }
 0xa27   :  { %v867_v10 = vpop.f32.mrf.mxu1 }
 0xa28   :  { %v1238_v8 = vmul.f32 -1.442695, %v870_v6  ;;  %v871_v14 = vadd.f32 %v867_v10, %v185_v12 }
 0xa2a   :  { %1319 = vpow2.f32 %v1238_v8  ;;  %v1239_v26 = vmul.f32 -1.442695, %v871_v14 }
 0xa2b   :  { %1321 = vtanh.f32 %v871_v14  ;;  %v195_v14 = vadd.f32 %v1701_v61, %v1594_v38 }
 0xa37   :  { %v1320_v16 = vpop.eup %1319 }
 0xa38   :  { %v878_v18 = vadd.f32 1.0, %v1320_v16  ;;  %v1322_v20 = vpop.eup %1321 }
 0xa3a   :  { %1323 = vrcp.f32 %v878_v18 }
 0xa3b   :  { %1325 = vpow2.f32 %v1239_v26  ;;  %v197_v26 = vadd.f32 %v1703_v62, %v1597_v45 }
 0xa47   :  { %v1324_v22 = vpop.eup %1323 }
 0xa48   :  { %v886_v24 = vmul.f32 %v1324_v22, %v1322_v20  ;;  %v1326_v28 = vpop.eup %1325  ;;  %v885_v32 = vmul.f32 %v1324_v22, %v777_v43 }
 0xa49   :  { %v879_v30 = vadd.f32 1.0, %v1326_v28 }
 0xa4a   :  { %888 = vrot.lane.b32.xlu0 %v886_v24, %s1360_s2 }
 0xa4b   :  { %1327 = vrcp.f32 %v879_v30 }
 0xa58   :  { %v1328_v58 = vpop.eup %1327 }
 0xabc   :  { %v889_v57 = vpop.permute.xlu0 %888 }
 0xabd   :  { %v891_v48 = vadd.f32 %v889_v57, %v885_v32 }
 0xabf   :  { %1329 = vtanh.f32 %v891_v48 }
 0xacc   :  { %v1330_v50 = vpop.eup %1329 }
 0xacd   :  { %v1786_v51 = vmul.f32 %v1330_v50, %v1328_v58 }
 0xacf   :  { %909 = vrot.lane.b32.xlu1 %v1786_v51, %s1360_s2 }
 0xb41   :  { %v910_v52 = vpop.permute.xlu1 %909 }
 0xb42   :  { %1240 = vmatmul.mubr.msk.f32.vlgmr.msra.gmra.mxu0 %vm61_vm0, %v910_v52 }
 0xc02   :  { %v979_v1 = vpop.f32.mrf.mxu0 }
 0xc03   :  { %v984_v53 = vadd.f32 %v979_v1, %v189_v63 }
 0xc04   :  { %v981_v5 = vpop.f32.mrf.mxu0 }
 0xc05   :  { %v1241_v2 = vmul.f32 -1.442695, %v984_v53  ;;  %v985_v9 = vadd.f32 %v981_v5, %v191_v7 }
 0xc07   :  { %1331 = vpow2.f32 %v1241_v2  ;;  %v1242_v21 = vmul.f32 -1.442695, %v985_v9 }
 0xc08   :  { %1333 = vtanh.f32 %v985_v9 }
 0xc14   :  { %v1332_v54 = vpop.eup %1331 }
 0xc15   :  { %v992_v11 = vadd.f32 1.0, %v1332_v54  ;;  %v1334_v15 = vpop.eup %1333 }
 0xc17   :  { %1335 = vrcp.f32 %v992_v11 }
 0xc18   :  { %1337 = vpow2.f32 %v1242_v21 }
 0xc24   :  { %v1336_v17 = vpop.eup %1335 }
 0xc25   :  { %v1000_v19 = vmul.f32 %v1336_v17, %v1334_v15  ;;  %v1338_v23 = vpop.eup %1337  ;;  %v999_v25 = vmul.f32 %v1336_v17, %v891_v48 }
 0xc26   :  { %v993_v60 = vadd.f32 1.0, %v1338_v23 }
 0xc27   :  { %1002 = vrot.lane.b32.xlu0 %v1000_v19, %s1360_s2 }
 0xc28   :  { %1339 = vrcp.f32 %v993_v60 }
 0xc2b   :  { %320 = vrot.lane.b32.xlu0 %v1224_v59, %s1360_s2 }
 0xc35   :  { %v1340_v31 = vpop.eup %1339 }
 0xc99   :  { %v1003_v27 = vpop.permute.xlu0 %1002 }
 0xc9a   :  { %v1800_v29 = vadd.f32 %v1003_v27, %v999_v25  ;;  %v11_v27 = vstv %s1892_s5  ;;  %s1362_s5 = smov 2  }
 0xc9b   :  { %12 = vst [vmem:[#allocation2] sm:$0x1] %v11_v27 }
 0xc9c   :  { %1341 = vtanh.f32 %v1800_v29 }
 0xc9d   :  { %v1805_v35 = vpop.permute.xlu0 %320 }
 0xc9e   :  { %v323_v36 = vmul.f32 %v1805_v35, %v1609_v0  ;;  %v438_v0 = vmul.f32 %v1665_v49, %v1805_v35  ;;  %v552_v47 = vmul.f32 %v1708_v37, %v1805_v35  ;;  %v666_v12 = vmul.f32 %v1734_v13, %v1805_v35 }
 0xc9f   :  { %v780_v45 = vmul.f32 %v1760_v46, %v1805_v35  ;;  %v894_v62 = vmul.f32 %v1786_v51, %v1805_v35 }
 0xca9   :  { %v1342_v33 = vpop.eup %1341 }
 0xcaa   :  { %v1803_v34 = vmul.f32 %v1342_v33, %v1340_v31 }
 0xcac   :  { %1023 = vrot.lane.b32.xlu1 %v1803_v34, %s1360_s2  ;;  %v1008_v50 = vmul.f32 %v1803_v34, %v1805_v35 }
 0xcb0   :  { %325 = vrot.lane.b32.xlu1 %v323_v36, %s1360_s2 }
 0xcb4   :  { %332 = vrot.lane.b32.xlu1 %v323_v36, %s1361_s4 }
 0xd1e   :  { %v1024_v39 = vpop.permute.xlu1 %1023 }
 0xd1f   :  { %1243 = vmatmul.mubr.msk.f32.vlgmr.msra.gmra.mxu1 %vm61_vm0, %v1024_v39 }
 0xd22   :  { %v326_v55 = vpop.permute.xlu1 %325 }
 0xd23   :  { %v329_v40 = vsel %vm328_vm1, %v326_v55, 0.0 }
 0xd24   :  { %330 = vadd.xlane.f32.xlu0 %v329_v40 }
 0xd26   :  { %v333_v41 = vpop.permute.xlu1 %332 }
 0xd27   :  { %v335_v42 = vsel %vm328_vm1, %v333_v41, 0.0 }
 0xd28   :  { %336 = vadd.xlane.f32.xlu1 %v335_v42 }
 0xd3a   :  { %440 = vrot.lane.b32.xlu0 %v438_v0, %s1360_s2 }
 0xdad   :  { %v1819_v43 = vpop.xlane.xlu0 %330 }
 0xdb1   :  { %v441_v56 = vpop.permute.xlu0 %440  ;;  %v1826_v3 = vpop.xlane.xlu1 %336 }
 0xdb2   :  { %v443_v44 = vsel %vm328_vm1, %v441_v56, 0.0 }
 0xdb3   :  { %444 = vadd.xlane.f32.xlu1 %v443_v44  ;;  %v1246_v44 = vld [vmem:[#allocation2] ss:$0 sm:$0xff] }
 0xdc4   :  { %446 = vrot.lane.b32.xlu1 %v438_v0, %s1361_s4 }
 0xdc8   :  { %554 = vrot.lane.b32.xlu1 %v552_v47, %s1360_s2 }
 0xddf   :  { %v1093_v37 = vpop.f32.mrf.mxu1 }
 0xde0   :  { %v1098_v16 = vadd.f32 %v1093_v37, %v195_v14 }
 0xde1   :  { %v1095_v22 = vpop.f32.mrf.mxu1 }
 0xde2   :  { %v1244_v18 = vmul.f32 -1.442695, %v1098_v16  ;;  %v1099_v30 = vadd.f32 %v1095_v22, %v197_v26 }
 0xde4   :  { %1343 = vpow2.f32 %v1244_v18  ;;  %v1245_v52 = vmul.f32 -1.442695, %v1099_v30 }
 0xdf1   :  { %v1344_v20 = vpop.eup %1343 }
 0xdf2   :  { %v1106_v28 = vadd.f32 1.0, %v1344_v20 }
 0xdf4   :  { %1345 = vrcp.f32 %v1106_v28 }
 0xdf5   :  { %1347 = vtanh.f32 %v1099_v30 }
 0xdf6   :  { %1349 = vpow2.f32 %v1245_v52 }
 0xe01   :  { %v1346_v61 = vpop.eup %1345 }
 0xe02   :  { %v1348_v48 = vpop.eup %1347  ;;  %v1113_v51 = vmul.f32 %v1346_v61, %v1800_v29 }
 0xe03   :  { %v1114_v58 = vmul.f32 %v1348_v48, %v1346_v61  ;;  %v1350_v46 = vpop.eup %1349 }
 0xe04   :  { %v1107_v53 = vadd.f32 1.0, %v1350_v46 }
 0xe06   :  { %1351 = vrcp.f32 %v1107_v53 }
 0xe13   :  { %v1352_v59 = vpop.eup %1351 }
 0xe3c   :  { %v1828_v4 = vpop.xlane.xlu1 %444 }
 0xe40   :  { %v447_v49 = vpop.permute.xlu1 %446 }
 0xe41   :  { %v449_v6 = vsel %vm328_vm1, %v447_v49, 0.0 }
 0xe42   :  { %450 = vadd.xlane.f32.xlu0 %v449_v6 }
 0xe44   :  { %v555_v8 = vpop.permute.xlu1 %554 }
 0xe45   :  { %v557_v10 = vsel %vm328_vm1, %v555_v8, 0.0 }
 0xe46   :  { %558 = vadd.xlane.f32.xlu1 %v557_v10 }
 0xe58   :  { %560 = vrot.lane.b32.xlu0 %v552_v47, %s1361_s4 }
 0xe5c   :  { %668 = vrot.lane.b32.xlu0 %v666_v12, %s1360_s2 }
 0xecb   :  { %v1838_v24 = vpop.xlane.xlu0 %450 }
 0xecf   :  { %v561_v32 = vpop.permute.xlu0 %560  ;;  %v559_v63 = vpop.xlane.xlu1 %558 }
 0xed0   :  { %v563_v13 = vsel %vm328_vm1, %v561_v32, 0.0 }
 0xed1   :  { %564 = vadd.xlane.f32.xlu1 %v563_v13 }
 0xed3   :  { %v669_v57 = vpop.permute.xlu0 %668 }
 0xed4   :  { %v671_v38 = vsel %vm328_vm1, %v669_v57, 0.0 }
 0xed5   :  { %672 = vadd.xlane.f32.xlu0 %v671_v38 }
 0xee2   :  { %1116 = vrot.lane.b32.xlu1 %v1114_v58, %s1360_s2 }
 0xee6   :  { %674 = vrot.lane.b32.xlu1 %v666_v12, %s1361_s4 }
 0xeeb   :  { %782 = vrot.lane.b32.xlu0 %v780_v45, %s1360_s2 }
 0xeef   :  { %902 = vrot.lane.b32.xlu0 %v894_v62, %s1361_s4 }
 0xef3   :  { %788 = vrot.lane.b32.xlu0 %v780_v45, %s1361_s4 }
 0xef7   :  { %896 = vrot.lane.b32.xlu0 %v894_v62, %s1360_s2 }
 0xefb   :  { %1010 = vrot.lane.b32.xlu0 %v1008_v50, %s1360_s2 }
 0xf5a   :  { %v1857_v1 = vpop.xlane.xlu1 %564 }
 0xf5e   :  { %v673_v2 = vpop.xlane.xlu0 %672  ;;  %v1117_v5 = vpop.permute.xlu1 %1116 }
 0xf5f   :  { %v1119_v7 = vadd.f32 %v1117_v5, %v1113_v51 }
 0xf61   :  { %1353 = vtanh.f32 %v1119_v7 }
 0xf62   :  { %v783_v9 = vpop.permute.xlu0 %782  ;;  %v675_v54 = vpop.permute.xlu1 %674 }
 0xf63   :  { %v677_v11 = vsel %vm328_vm1, %v675_v54, 0.0  ;;  %v785_v31 = vsel %vm328_vm1, %v783_v9, 0.0 }
 0xf64   :  { %678 = vadd.xlane.f32.xlu1 %v677_v11 }
 0xf66   :  { %v903_v15 = vpop.permute.xlu0 %902 }
 0xf67   :  { %v905_v33 = vsel %vm328_vm1, %v903_v15, 0.0 }
 0xf6a   :  { %v789_v17 = vpop.permute.xlu0 %788 }
 0xf6b   :  { %v791_v19 = vsel %vm328_vm1, %v789_v17, 0.0 }
 0xf6c   :  { %792 = vadd.xlane.f32.xlu0 %v791_v19 }
 0xf6e   :  { %v1354_v21 = vpop.eup %1353  ;;  %v897_v23 = vpop.permute.xlu0 %896 }
 0xf6f   :  { %v899_v60 = vsel %vm328_vm1, %v897_v23, 0.0  ;;  %v1121_v25 = vmul.f32 %v1354_v21, %v1352_v59 }
 0xf70   :  { %900 = vadd.xlane.f32.xlu0 %v899_v60 }
 0xf71   :  { %v1122_v29 = vmul.f32 %v1121_v25, %v1805_v35 }
 0xf72   :  { %v1011_v34 = vpop.permute.xlu0 %1010 }
 0xf73   :  { %v1013_v36 = vsel %vm328_vm1, %v1011_v34, 0.0 }
 0xf75   :  { %1016 = vrot.lane.b32.xlu1 %v1008_v50, %s1361_s4 }
 0xf86   :  { %1124 = vrot.lane.b32.xlu0 %v1122_v29, %s1360_s2 }
 0xf99   :  { %786 = vadd.xlane.f32.xlu1 %v785_v31 }
 0xf9d   :  { %906 = vadd.xlane.f32.xlu1 %v905_v33 }
 0xfa5   :  { %1014 = vadd.xlane.f32.xlu0 %v1013_v36 }
 0xfed   :  { %v679_v39 = vpop.xlane.xlu1 %678 }
 0xff1   :  { %v1017_v55 = vpop.permute.xlu1 %1016 }
 0xff2   :  { %v1019_v40 = vsel %vm328_vm1, %v1017_v55, 0.0 }
 0xff3   :  { %1020 = vadd.xlane.f32.xlu1 %v1019_v40 }
 0xff5   :  { %v793_v35 = vpop.xlane.xlu0 %792 }
 0xff6   :  { %v1148_v47 = vadd.f32 %v793_v35, %v673_v2 }
 0xff8   :  { %v1149_v8 = vadd.f32 %v1246_v44, %v1148_v47 }
 0xff9   :  { %v901_v42 = vpop.xlane.xlu0 %900 }
 0xffa   :  { %v1152_v28 = vadd.f32 %v901_v42, %v1857_v1 }
 0xffc   :  { %v1153_v30 = vadd.f32 %v1246_v44, %v1152_v28 }
 0xffd   :  { %v1125_v6 = vpop.permute.xlu0 %1124 }
 0xffe   :  { %v1127_v26 = vsel %vm328_vm1, %v1125_v6, 0.0 }
0x1004   :  { %1130 = vrot.lane.b32.xlu1 %v1122_v29, %s1361_s4 }
0x1022   :  { %v787_v41 = vpop.xlane.xlu1 %786 }
0x1023   :  { %v1150_v10 = vadd.f32 %v787_v41, %v679_v39 }
0x1025   :  { %v1151_v37 = vadd.f32 %v1246_v44, %v1150_v10 }
0x1026   :  { %v907_v0 = vpop.xlane.xlu1 %906 }
0x1027   :  { %v1146_v56 = vadd.f32 %v907_v0, %v559_v63 }
0x1029   :  { %v1147_v49 = vadd.f32 %v1246_v44, %v1146_v56 }
0x102b   :  { %1163 = vrot.lane.b32.xlu1 %v1147_v49, %s1362_s5 }
0x102e   :  { %v1015_v12 = vpop.xlane.xlu0 %1014 }
0x102f   :  { %1167 = vrot.lane.b32.xlu1 %v1149_v8, %s1363_s8  ;;  %v1154_v14 = vadd.f32 %v1015_v12, %v1838_v24 }
0x1031   :  { %v1155_v16 = vadd.f32 %v1246_v44, %v1154_v14 }
0x1033   :  { %1171 = vrot.lane.b32.xlu1 %v1151_v37, %s1364_s9 }
0x1037   :  { %1179 = vrot.lane.b32.xlu1 %v1155_v16, %s1365_s10 }
0x107c   :  { %v1021_v18 = vpop.xlane.xlu1 %1020 }
0x107d   :  { %v1144_v20 = vadd.f32 %v1021_v18, %v1828_v4 }
0x107f   :  { %v1145_v22 = vadd.f32 %v1246_v44, %v1144_v20 }
0x1080   :  { %v1131_v24 = vpop.permute.xlu1 %1130 }
0x1081   :  { %1159 = vrot.lane.b32.xlu0 %v1145_v22, %s1366_s11  ;;  %v1133_v32 = vsel %vm328_vm1, %v1131_v24, 0.0 }
0x109d   :  { %v1164_v45 = vpop.permute.xlu1 %1163 }
0x10a0   :  { %1128 = vadd.xlane.f32.xlu0 %v1127_v26 }
0x10a1   :  { %v1168_v52 = vpop.permute.xlu1 %1167 }
0x10a5   :  { %v1172_v1 = vpop.permute.xlu1 %1171 }
0x10a9   :  { %v1180_v51 = vpop.permute.xlu1 %1179 }
0x10b6   :  { %1175 = vrot.lane.b32.xlu0 %v1153_v30, %s1367_s12 }
0x10d5   :  { %1134 = vadd.xlane.f32.xlu0 %v1133_v32 }
0x10f3   :  { %v1160_v13 = vpop.permute.xlu0 %1159 }
0x1129   :  { %v1129_v57 = vpop.xlane.xlu0 %1128 }
0x112a   :  { %v1156_v38 = vadd.f32 %v1129_v57, %v1826_v3 }
0x112c   :  { %v1157_v4 = vadd.f32 %v1246_v44, %v1156_v38 }
0x112d   :  { %v1176_v61 = vpop.permute.xlu0 %1175 }
0x112e   :  { %1183 = vrot.lane.b32.xlu0 %v1157_v4, %s1368_s13 }
0x115e   :  { %v1135_v48 = vpop.xlane.xlu0 %1134 }
0x115f   :  { %v1136_v58 = vadd.f32 %v1135_v48, %v1819_v43 }
0x1161   :  { %v1143_v62 = vadd.f32 %v1246_v44, %v1136_v58 }
0x1163   :  { %v1187_v50 = vsel %vm1186_vm2, %v1143_v62, %v1160_v13 }
0x1164   :  { %v1189_v63 = vsel %vm1188_vm3, %v1187_v50, %v1164_v45 }
0x1165   :  { %v1191_v46 = vsel %vm1190_vm4, %v1189_v63, %v1168_v52 }
0x1166   :  { %v1193_v3 = vsel %vm1192_vm5, %v1191_v46, %v1172_v1 }
0x1167   :  { %v1195_v53 = vsel %vm1194_vm6, %v1193_v3, %v1176_v61 }
0x1168   :  { %v1197_v43 = vsel %vm1196_vm7, %v1195_v53, %v1180_v51 }
0x11a0   :  { %v1184_v2 = vpop.permute.xlu0 %1183 }
0x11a1   :  { %v1199_v5 = vsel %vm1198_vm8, %v1197_v43, %v1184_v2 }
0x11a2   :  { %1201 = vst.msk [vmem:[%s1893_s6] sm:$0xff] %vm1200_vm9, %v1199_v5  ;;  %v1247_v7 = vmul.f32 -1.442695, %v1199_v5 }
0x11a4   :  { %1355 = vpow2.f32 %v1247_v7 }
0x11b1   :  { %v1356_v9 = vpop.eup %1355 }
0x11b2   :  { %v1205_v54 = vadd.f32 1.0, %v1356_v9 }
0x11b4   :  { %1357 = vrcp.f32 %v1205_v54 }
0x11c1   :  { %v1358_v11 = vpop.eup %1357 }
0x11c2   :  { %1248 = vst.msk [vmem:[%s1893_s6 + $0x8] sm:$0xff] %vm1200_vm9, %v1358_v11 }

</bundles_post_ra>
